<compile_context>
chip_gen: v7x
topology: tpu7x:2x2x1
jax: 0.10.0
libtpu: 0.0.40
codegen_flags: <defaults>
</compile_context>

<pallas_src>
import functools
import math

import jax
import jax.numpy as jnp
from jax import lax
from jax.experimental import pallas as pl
from jax.experimental.pallas import tpu as pltpu


def _round_up(x, m):
    return (x + m - 1) // m * m


def _vmem_budget_bytes():
    """~75% of physical per-core VMEM (headroom for compiler scratch/spills)."""
    phys = 64 * 2**20  # conservative (v7x-sized) fallback
    try:
        info = pltpu.get_tpu_info()
        cap = getattr(info, "vmem_capacity_bytes", None)
        if cap:
            phys = int(cap)
    except Exception:
        pass
    return int(phys * 0.75)


# --------------------------------------------------------------------------- #
# Fused kernel: chunk input projection + recurrence                            #
#   grid = (batch tiles ["parallel"], time chunks ["arbitrary"])               #
# --------------------------------------------------------------------------- #
def _gru_fused_kernel(x_ref, wih_ref, whh_ref, bx_ref, bhn_ref, out_ref,
                      h_ref, gx_ref, *, t_chunk, b_tile, h_pad, matmul_dtype):
    c = pl.program_id(1)              # time-chunk index (innermost, sequential)

    @pl.when(c == 0)
    def _init():                      # h0 = 0, restarted for every batch tile
        h_ref[...] = jnp.zeros_like(h_ref)

    # --- chunk input projection (h-independent, off the serial path) ----------
    x = x_ref[...]                                            # (t_chunk, B_TILE, D_pad)
    x2d = x.reshape(t_chunk * b_tile, x.shape[-1])
    gx = jnp.dot(x2d, wih_ref[...], preferred_element_type=jnp.float32)
    gx = gx + bx_ref[...]                                     # folded b_ih (+ b_hr, b_hz)
    gx_ref[...] = gx.reshape(t_chunk, b_tile, 3 * h_pad)

    whh = whh_ref[...]                                        # (H_pad, 3*H_pad) resident
    bhn = jnp.broadcast_to(bhn_ref[...], (b_tile, h_pad))     # hoisted broadcast

    # --- serial recurrence over the chunk --------------------------------------
    def step(i, h):
        gxi = gx_ref[i]                                       # (B_TILE, 3*H_pad) f32
        hm = h.astype(matmul_dtype)
        # per-gate dots, r first (lets the r/z sigmoids overlap the gh_n pushes)
        gh_r = jnp.dot(hm, whh[:, 0 * h_pad:1 * h_pad],
                       preferred_element_type=jnp.float32)
        gh_n = jnp.dot(hm, whh[:, 2 * h_pad:3 * h_pad],
                       preferred_element_type=jnp.float32)
        gh_z = jnp.dot(hm, whh[:, 1 * h_pad:2 * h_pad],
                       preferred_element_type=jnp.float32)
        r = jax.nn.sigmoid(gxi[:, 0 * h_pad:1 * h_pad] + gh_r)
        z = jax.nn.sigmoid(gxi[:, 1 * h_pad:2 * h_pad] + gh_z)
        n = jnp.tanh(gxi[:, 2 * h_pad:3 * h_pad] + r * (gh_n + bhn))
        h_new = n + z * (h - n)       # == (1 - z) * n + z * h
        out_ref[i] = h_new
        return h_new

    h_ref[...] = lax.fori_loop(0, t_chunk, step, h_ref[...],
                               unroll=min(8, t_chunk))


# --------------------------------------------------------------------------- #
# Wrapper                                                                      #
# --------------------------------------------------------------------------- #
def gru_forward_pallas(x_btd, w_ih, w_hh, b_ih, b_hh, *,
                       t_chunk=32, matmul_dtype=jnp.bfloat16):
    """x_btd: (B, T, D) batch_first like the PyTorch module. Returns (B, T, H) f32."""
    B, T, D = x_btd.shape
    H = w_hh.shape[1]
    assert w_ih.shape == (3 * H, D) and w_hh.shape == (3 * H, H)
    f32 = jnp.float32
    mm = jnp.dtype(matmul_dtype)
    item_mm = mm.itemsize

    # TODO(synk): for H < 128 the per-gate 128-lane padding wastes ~(128/H)x MXU,
    # HBM and gate-math work; production configs (H >= 128) are unaffected.
    H_pad = _round_up(H, 128)
    D_pad = _round_up(D, 128)

    # ---- tile sizes: fill the MXU M dim (B_TILE up to 128), amortize per-grid-step
    # overhead (t_chunk up to 32), then shrink to fit the per-generation VMEM budget.
    B_TILE = min(128, _round_up(B, 8))
    t_chunk = max(1, min(t_chunk, T))
    cap = _vmem_budget_bytes()

    def vmem_need(tc, bt):
        return (2 * tc * bt * D_pad * item_mm          # x block  (double-buffered)
                + 2 * tc * bt * H_pad * 4              # out block (double-buffered)
                + D_pad * 3 * H_pad * item_mm          # W_ih (Buffered(1))
                + H_pad * 3 * H_pad * item_mm          # W_hh (Buffered(1))
                + 3 * H_pad * 4 + H_pad * 4            # bx, bhn
                + bt * H_pad * 4                       # hidden carry scratch
                + tc * bt * 3 * H_pad * 4)             # chunk gx scratch (f32)

    while vmem_need(t_chunk, B_TILE) > 0.85 * cap:
        if t_chunk > 8:
            t_chunk = max(8, t_chunk // 2)
        elif B_TILE > 8:
            B_TILE = max(8, B_TILE // 2)
        else:
            break

    T_pad = _round_up(T, t_chunk)
    B_pad = _round_up(B, B_TILE)
    n_bt = B_pad // B_TILE        # >= 2 for large B -> v7x megacore can shard batch
    n_tc = T_pad // t_chunk

    # ---- repack weights into per-gate, lane-aligned column blocks (r | z | n) ---
    # torch row layout of w_ih / w_hh / biases: [0:H]=r, [H:2H]=z, [2H:3H]=n.
    w_ih_g = w_ih.astype(f32).reshape(3, H, D)
    w_hh_g = w_hh.astype(f32).reshape(3, H, H)
    b_ih_g = b_ih.astype(f32).reshape(3, H)
    b_hh_g = b_hh.astype(f32).reshape(3, H)

    wih_t = jnp.zeros((D_pad, 3 * H_pad), f32)     # x @ wih_t
    whh_t = jnp.zeros((H_pad, 3 * H_pad), f32)     # h @ whh_t
    bx = jnp.zeros((1, 3 * H_pad), f32)            # folded: b_ih (+ b_hr, b_hz)
    for k in range(3):
        wih_t = wih_t.at[:D, k * H_pad:k * H_pad + H].set(w_ih_g[k].T)
        whh_t = whh_t.at[:H, k * H_pad:k * H_pad + H].set(w_hh_g[k].T)
        fold = b_ih_g[k] + (b_hh_g[k] if k < 2 else 0.0)
        bx = bx.at[0, k * H_pad:k * H_pad + H].set(fold)
    # b_hn must stay inside r*(...); broadcast over sublanes happens in-kernel.
    bhn = jnp.zeros((1, H_pad), f32).at[0, :H].set(b_hh_g[2])

    # ---- cast first, then transpose+pad to time-major (T_pad, B_pad, D_pad) -----
    x_tbd = jnp.transpose(x_btd.astype(mm), (1, 0, 2))
    x_tbd = jnp.pad(x_tbd, ((0, T_pad - T), (0, B_pad - B), (0, D_pad - D)))

    vmem_limit = int(min(cap, max(32 * 2**20,
                                  int(1.25 * vmem_need(t_chunk, B_TILE)))))

    out_tbh = pl.pallas_call(
        functools.partial(_gru_fused_kernel, t_chunk=t_chunk, b_tile=B_TILE,
                          h_pad=H_pad, matmul_dtype=mm),
        out_shape=jax.ShapeDtypeStruct((T_pad, B_pad, H_pad), f32),
        grid=(n_bt, n_tc),
        in_specs=[
            pl.BlockSpec((t_chunk, B_TILE, D_pad), lambda b, c: (c, b, 0)),
            pl.BlockSpec((D_pad, 3 * H_pad), lambda b, c: (0, 0),
                         pipeline_mode=pl.Buffered(1)),
            pl.BlockSpec((H_pad, 3 * H_pad), lambda b, c: (0, 0),
                         pipeline_mode=pl.Buffered(1)),
            pl.BlockSpec((1, 3 * H_pad), lambda b, c: (0, 0),
                         pipeline_mode=pl.Buffered(1)),
            pl.BlockSpec((1, H_pad), lambda b, c: (0, 0),
                         pipeline_mode=pl.Buffered(1)),
        ],
        out_specs=pl.BlockSpec((t_chunk, B_TILE, H_pad), lambda b, c: (c, b, 0)),
        scratch_shapes=[
            pltpu.VMEM((B_TILE, H_pad), jnp.float32),               # hidden carry
            pltpu.VMEM((t_chunk, B_TILE, 3 * H_pad), jnp.float32),  # chunk gx
        ],
        compiler_params=pltpu.CompilerParams(
            dimension_semantics=("parallel", "arbitrary"),
            vmem_limit_bytes=vmem_limit,
        ),
    )(x_tbd, wih_t.astype(mm), whh_t.astype(mm), bx, bhn)

    # TODO(synk): the final (T,B,H)->(B,T,H) transpose is one extra HBM pass; it
    # could be fused into the consumer, or the out BlockSpec rewired to (B,T,H)
    # at the cost of sublane-sparse per-step stores.
    return jnp.transpose(out_tbh[:T, :B, :H], (1, 0, 2))


# --------------------------------------------------------------------------- #
# Pure-JAX reference (torch.nn.GRU forward, batch_first, h0 = 0)               #
# --------------------------------------------------------------------------- #
def gru_forward_ref(x_btd, w_ih, w_hh, b_ih, b_hh):
    B, T, D = x_btd.shape
    H = w_hh.shape[1]
    wih_t = jnp.transpose(w_ih)
    whh_t = jnp.transpose(w_hh)

    def step(h, x_t):
        gx = x_t @ wih_t + b_ih
        gh = h @ whh_t + b_hh
        r = jax.nn.sigmoid(gx[:, :H] + gh[:, :H])
        z = jax.nn.sigmoid(gx[:, H:2 * H] + gh[:, H:2 * H])
        n = jnp.tanh(gx[:, 2 * H:] + r * gh[:, 2 * H:])
        h_new = (1.0 - z) * n + z * h
        return h_new, h_new

    h0 = jnp.zeros((B, H), jnp.float32)
    _, outs = lax.scan(step, h0, jnp.transpose(x_btd, (1, 0, 2)))
    return jnp.transpose(outs, (1, 0, 2))


if __name__ == "__main__":
    # Small shapes consistent with the module's forward: x is (B, T, input_dim).
    B, T, INPUT_DIM, HIDDEN_DIM = 2, 8, 32, 32

    key = jax.random.PRNGKey(0)
    kx, k1, k2, k3, k4 = jax.random.split(key, 5)

    # Deterministic init matching nn.GRU's uniform(-1/sqrt(H), 1/sqrt(H)).
    bound = 1.0 / math.sqrt(HIDDEN_DIM)
    w_ih = jax.random.uniform(k1, (3 * HIDDEN_DIM, INPUT_DIM), jnp.float32, -bound, bound)
    w_hh = jax.random.uniform(k2, (3 * HIDDEN_DIM, HIDDEN_DIM), jnp.float32, -bound, bound)
    b_ih = jax.random.uniform(k3, (3 * HIDDEN_DIM,), jnp.float32, -bound, bound)
    b_hh = jax.random.uniform(k4, (3 * HIDDEN_DIM,), jnp.float32, -bound, bound)
    x = jax.random.normal(kx, (B, T, INPUT_DIM), jnp.float32)

    ref = jax.block_until_ready(gru_forward_ref(x, w_ih, w_hh, b_ih, b_hh))

    # f32 MXU operands (strict numerical check).
    out_f32 = jax.block_until_ready(
        gru_forward_pallas(x, w_ih, w_hh, b_ih, b_hh, matmul_dtype=jnp.float32))
    assert out_f32.shape == (B, T, HIDDEN_DIM)
    assert jnp.allclose(out_f32, ref, atol=1e-4, rtol=1e-4), "f32 Pallas GRU mismatch"

    # Default bf16 MXU operands (v6e/v7x fast path; f32 accumulation/carry/gates).
    out_bf16 = jax.block_until_ready(gru_forward_pallas(x, w_ih, w_hh, b_ih, b_hh))
    assert jnp.allclose(out_bf16, ref, atol=5e-2, rtol=5e-2), "bf16 Pallas GRU mismatch"

    print("KERNEL_OK")
</pallas_src>

<mosaic_0001>
module attributes {stable_mosaic.version = 11 : i64} {
  func.func @_gru_fused_kernel(%arg0: i32, %arg1: i32, %arg2: memref<8x8x128xf32, #tpu.memory_space<vmem>>, %arg3: memref<128x384xf32, #tpu.memory_space<vmem>>, %arg4: memref<128x384xf32, #tpu.memory_space<vmem>>, %arg5: memref<1x384xf32, #tpu.memory_space<vmem>>, %arg6: memref<1x128xf32, #tpu.memory_space<vmem>>, %arg7: memref<8x8x128xf32, #tpu.memory_space<vmem>>, %arg8: memref<8x128xf32, #tpu.memory_space<vmem>>, %arg9: memref<8x8x384xf32, #tpu.memory_space<vmem>>) attributes {dimension_semantics = [#tpu.dimension_semantics<parallel>, #tpu.dimension_semantics<arbitrary>], iteration_bounds = array<i64: 1, 1>, scalar_prefetch = 0 : i64, scratch_operands = 2 : i64, tpu.core_type = #tpu.core_type<tc>, window_params = [{transform_indices = @transform_0, window_bounds = array<i64: 8, 8, 128>}, {pipeline_mode = #tpu.pipeline_mode<synchronous>, transform_indices = @transform_1, window_bounds = array<i64: 128, 384>}, {pipeline_mode = #tpu.pipeline_mode<synchronous>, transform_indices = @transform_2, window_bounds = array<i64: 128, 384>}, {pipeline_mode = #tpu.pipeline_mode<synchronous>, transform_indices = @transform_3, window_bounds = array<i64: 1, 384>}, {pipeline_mode = #tpu.pipeline_mode<synchronous>, transform_indices = @transform_4, window_bounds = array<i64: 1, 128>}, {transform_indices = @transform_5, window_bounds = array<i64: 8, 8, 128>}]} {
    %c0_i32 = arith.constant 0 : i32
    %0 = arith.cmpi eq, %arg1, %c0_i32 : i32
    %1 = arith.extui %0 : i1 to i32
    %c0_i32_0 = arith.constant 0 : i32
    %2 = arith.cmpi ne, %1, %c0_i32_0 : i32
    scf.if %2 {
      %cst_91 = arith.constant 0.000000e+00 : f32
      %298 = vector.broadcast %cst_91 : f32 to vector<8x128xf32>
      %c0_92 = arith.constant 0 : index
      %c0_93 = arith.constant 0 : index
      %299 = vector.load %arg8[%c0_92, %c0_93] : memref<8x128xf32, #tpu.memory_space<vmem>>, vector<8x128xf32>
      tpu.vector_store %arg8[%c0_92, %c0_93], %298 {strides = array<i32>} : memref<8x128xf32, #tpu.memory_space<vmem>>, vector<8x128xf32>,
    } else {
    }
    %c0 = arith.constant 0 : index
    %c0_1 = arith.constant 0 : index
    %c0_2 = arith.constant 0 : index
    %3 = vector.load %arg2[%c0, %c0_1, %c0_2] : memref<8x8x128xf32, #tpu.memory_space<vmem>>, vector<8x8x128xf32>
    %4 = vector.shape_cast %3 : vector<8x8x128xf32> to vector<64x128xf32>
    %c0_3 = arith.constant 0 : index
    %c0_4 = arith.constant 0 : index
    %5 = vector.load %arg3[%c0_3, %c0_4] : memref<128x384xf32, #tpu.memory_space<vmem>>, vector<128x384xf32>
    %cst = arith.constant dense<0.000000e+00> : vector<64x384xf32>
    %6 = tpu.matmul %4, %5, %cst {dimension_numbers = #tpu.dot_dimension_numbers<[1], [0], [0], [1], [0, 0, 1, 1], [], []>} : vector<64x128xf32>, vector<128x384xf32>, vector<64x384xf32> -> vector<64x384xf32>
    %c0_5 = arith.constant 0 : index
    %c0_6 = arith.constant 0 : index
    %7 = vector.load %arg5[%c0_5, %c0_6] : memref<1x384xf32, #tpu.memory_space<vmem>>, vector<1x384xf32>
    %8 = vector.broadcast %7 : vector<1x384xf32> to vector<64x384xf32>
    %9 = arith.addf %6, %8 : vector<64x384xf32>
    %10 = vector.shape_cast %9 : vector<64x384xf32> to vector<8x8x384xf32>
    %c0_7 = arith.constant 0 : index
    %c0_8 = arith.constant 0 : index
    %c0_9 = arith.constant 0 : index
    %11 = vector.load %arg9[%c0_7, %c0_8, %c0_9] : memref<8x8x384xf32, #tpu.memory_space<vmem>>, vector<8x8x384xf32>
    tpu.vector_store %arg9[%c0_7, %c0_8, %c0_9], %10 {strides = array<i32>} : memref<8x8x384xf32, #tpu.memory_space<vmem>>, vector<8x8x384xf32>,
    %c0_10 = arith.constant 0 : index
    %c0_11 = arith.constant 0 : index
    %12 = vector.load %arg4[%c0_10, %c0_11] : memref<128x384xf32, #tpu.memory_space<vmem>>, vector<128x384xf32>
    %c0_12 = arith.constant 0 : index
    %c0_13 = arith.constant 0 : index
    %13 = vector.load %arg6[%c0_12, %c0_13] : memref<1x128xf32, #tpu.memory_space<vmem>>, vector<1x128xf32>
    %14 = vector.shape_cast %13 : vector<1x128xf32> to vector<1x128xf32>
    %15 = vector.broadcast %14 : vector<1x128xf32> to vector<8x128xf32>
    %c0_14 = arith.constant 0 : index
    %c0_15 = arith.constant 0 : index
    %16 = vector.load %arg8[%c0_14, %c0_15] : memref<8x128xf32, #tpu.memory_space<vmem>>, vector<8x128xf32>
    %c0_i32_16 = arith.constant 0 : i32
    %17 = arith.index_cast %c0_i32_16 : i32 to index
    %c0_17 = arith.constant 0 : index
    %c0_18 = arith.constant 0 : index
    %18 = vector.load %arg9[%17, %c0_17, %c0_18] : memref<8x8x384xf32, #tpu.memory_space<vmem>>, vector<1x8x384xf32>
    %19 = vector.shape_cast %18 : vector<1x8x384xf32> to vector<8x384xf32>
    %20 = vector.extract_strided_slice %12 {offsets = [0, 0], sizes = [128, 128], strides = [1, 1]} : vector<128x384xf32> to vector<128x128xf32>
    %cst_19 = arith.constant dense<0.000000e+00> : vector<8x128xf32>
    %21 = tpu.matmul %16, %20, %cst_19 {dimension_numbers = #tpu.dot_dimension_numbers<[1], [0], [0], [1], [0, 0, 1, 1], [], []>} : vector<8x128xf32>, vector<128x128xf32>, vector<8x128xf32> -> vector<8x128xf32>
    %22 = vector.extract_strided_slice %12 {offsets = [0, 256], sizes = [128, 128], strides = [1, 1]} : vector<128x384xf32> to vector<128x128xf32>
    %cst_20 = arith.constant dense<0.000000e+00> : vector<8x128xf32>
    %23 = tpu.matmul %16, %22, %cst_20 {dimension_numbers = #tpu.dot_dimension_numbers<[1], [0], [0], [1], [0, 0, 1, 1], [], []>} : vector<8x128xf32>, vector<128x128xf32>, vector<8x128xf32> -> vector<8x128xf32>
    %24 = vector.extract_strided_slice %12 {offsets = [0, 128], sizes = [128, 128], strides = [1, 1]} : vector<128x384xf32> to vector<128x128xf32>
    %cst_21 = arith.constant dense<0.000000e+00> : vector<8x128xf32>
    %25 = tpu.matmul %16, %24, %cst_21 {dimension_numbers = #tpu.dot_dimension_numbers<[1], [0], [0], [1], [0, 0, 1, 1], [], []>} : vector<8x128xf32>, vector<128x128xf32>, vector<8x128xf32> -> vector<8x128xf32>
    %26 = vector.extract_strided_slice %19 {offsets = [0, 0], sizes = [8, 128], strides = [1, 1]} : vector<8x384xf32> to vector<8x128xf32>
    %27 = arith.addf %26, %21 : vector<8x128xf32>
    %28 = arith.negf %27 : vector<8x128xf32>
    %29 = math.exp %28 : vector<8x128xf32>
    %cst_22 = arith.constant 1.000000e+00 : f32
    %30 = vector.broadcast %cst_22 : f32 to vector<8x128xf32>
    %31 = arith.addf %30, %29 : vector<8x128xf32>
    %32 = arith.divf %30, %31 : vector<8x128xf32>
    %33 = vector.extract_strided_slice %19 {offsets = [0, 128], sizes = [8, 128], strides = [1, 1]} : vector<8x384xf32> to vector<8x128xf32>
    %34 = arith.addf %33, %25 : vector<8x128xf32>
    %35 = arith.negf %34 : vector<8x128xf32>
    %36 = math.exp %35 : vector<8x128xf32>
    %cst_23 = arith.constant 1.000000e+00 : f32
    %37 = vector.broadcast %cst_23 : f32 to vector<8x128xf32>
    %38 = arith.addf %37, %36 : vector<8x128xf32>
    %39 = arith.divf %37, %38 : vector<8x128xf32>
    %40 = vector.extract_strided_slice %19 {offsets = [0, 256], sizes = [8, 128], strides = [1, 1]} : vector<8x384xf32> to vector<8x128xf32>
    %41 = arith.addf %23, %15 : vector<8x128xf32>
    %42 = arith.mulf %32, %41 : vector<8x128xf32>
    %43 = arith.addf %40, %42 : vector<8x128xf32>
    %44 = math.tanh %43 : vector<8x128xf32>
    %45 = arith.subf %16, %44 : vector<8x128xf32>
    %46 = arith.mulf %39, %45 : vector<8x128xf32>
    %47 = arith.addf %44, %46 : vector<8x128xf32>
    %48 = arith.index_cast %c0_i32_16 : i32 to index
    %c0_24 = arith.constant 0 : index
    %c0_25 = arith.constant 0 : index
    %49 = vector.load %arg7[%48, %c0_24, %c0_25] : memref<8x8x128xf32, #tpu.memory_space<vmem>>, vector<1x8x128xf32>
    %50 = vector.shape_cast %49 : vector<1x8x128xf32> to vector<8x128xf32>
    %51 = vector.shape_cast %47 : vector<8x128xf32> to vector<1x8x128xf32>
    tpu.vector_store %arg7[%48, %c0_24, %c0_25], %51 {strides = array<i32>} : memref<8x8x128xf32, #tpu.memory_space<vmem>>, vector<1x8x128xf32>,
    %c1_i32 = arith.constant 1 : i32
    %52 = arith.index_cast %c1_i32 : i32 to index
    %c0_26 = arith.constant 0 : index
    %c0_27 = arith.constant 0 : index
    %53 = vector.load %arg9[%52, %c0_26, %c0_27] : memref<8x8x384xf32, #tpu.memory_space<vmem>>, vector<1x8x384xf32>
    %54 = vector.shape_cast %53 : vector<1x8x384xf32> to vector<8x384xf32>
    %55 = vector.extract_strided_slice %12 {offsets = [0, 0], sizes = [128, 128], strides = [1, 1]} : vector<128x384xf32> to vector<128x128xf32>
    %cst_28 = arith.constant dense<0.000000e+00> : vector<8x128xf32>
    %56 = tpu.matmul %47, %55, %cst_28 {dimension_numbers = #tpu.dot_dimension_numbers<[1], [0], [0], [1], [0, 0, 1, 1], [], []>} : vector<8x128xf32>, vector<128x128xf32>, vector<8x128xf32> -> vector<8x128xf32>
    %57 = vector.extract_strided_slice %12 {offsets = [0, 256], sizes = [128, 128], strides = [1, 1]} : vector<128x384xf32> to vector<128x128xf32>
    %cst_29 = arith.constant dense<0.000000e+00> : vector<8x128xf32>
    %58 = tpu.matmul %47, %57, %cst_29 {dimension_numbers = #tpu.dot_dimension_numbers<[1], [0], [0], [1], [0, 0, 1, 1], [], []>} : vector<8x128xf32>, vector<128x128xf32>, vector<8x128xf32> -> vector<8x128xf32>
    %59 = vector.extract_strided_slice %12 {offsets = [0, 128], sizes = [128, 128], strides = [1, 1]} : vector<128x384xf32> to vector<128x128xf32>
    %cst_30 = arith.constant dense<0.000000e+00> : vector<8x128xf32>
    %60 = tpu.matmul %47, %59, %cst_30 {dimension_numbers = #tpu.dot_dimension_numbers<[1], [0], [0], [1], [0, 0, 1, 1], [], []>} : vector<8x128xf32>, vector<128x128xf32>, vector<8x128xf32> -> vector<8x128xf32>
    %61 = vector.extract_strided_slice %54 {offsets = [0, 0], sizes = [8, 128], strides = [1, 1]} : vector<8x384xf32> to vector<8x128xf32>
    %62 = arith.addf %61, %56 : vector<8x128xf32>
    %63 = arith.negf %62 : vector<8x128xf32>
    %64 = math.exp %63 : vector<8x128xf32>
    %cst_31 = arith.constant 1.000000e+00 : f32
    %65 = vector.broadcast %cst_31 : f32 to vector<8x128xf32>
    %66 = arith.addf %65, %64 : vector<8x128xf32>
    %67 = arith.divf %65, %66 : vector<8x128xf32>
    %68 = vector.extract_strided_slice %54 {offsets = [0, 128], sizes = [8, 128], strides = [1, 1]} : vector<8x384xf32> to vector<8x128xf32>
    %69 = arith.addf %68, %60 : vector<8x128xf32>
    %70 = arith.negf %69 : vector<8x128xf32>
    %71 = math.exp %70 : vector<8x128xf32>
    %cst_32 = arith.constant 1.000000e+00 : f32
    %72 = vector.broadcast %cst_32 : f32 to vector<8x128xf32>
    %73 = arith.addf %72, %71 : vector<8x128xf32>
    %74 = arith.divf %72, %73 : vector<8x128xf32>
    %75 = vector.extract_strided_slice %54 {offsets = [0, 256], sizes = [8, 128], strides = [1, 1]} : vector<8x384xf32> to vector<8x128xf32>
    %76 = arith.addf %58, %15 : vector<8x128xf32>
    %77 = arith.mulf %67, %76 : vector<8x128xf32>
    %78 = arith.addf %75, %77 : vector<8x128xf32>
    %79 = math.tanh %78 : vector<8x128xf32>
    %80 = arith.subf %47, %79 : vector<8x128xf32>
    %81 = arith.mulf %74, %80 : vector<8x128xf32>
    %82 = arith.addf %79, %81 : vector<8x128xf32>
    %83 = arith.index_cast %c1_i32 : i32 to index
    %c0_33 = arith.constant 0 : index
    %c0_34 = arith.constant 0 : index
    %84 = vector.load %arg7[%83, %c0_33, %c0_34] : memref<8x8x128xf32, #tpu.memory_space<vmem>>, vector<1x8x128xf32>
    %85 = vector.shape_cast %84 : vector<1x8x128xf32> to vector<8x128xf32>
    %86 = vector.shape_cast %82 : vector<8x128xf32> to vector<1x8x128xf32>
    tpu.vector_store %arg7[%83, %c0_33, %c0_34], %86 {strides = array<i32>} : memref<8x8x128xf32, #tpu.memory_space<vmem>>, vector<1x8x128xf32>,
    %c2_i32 = arith.constant 2 : i32
    %87 = arith.index_cast %c2_i32 : i32 to index
    %c0_35 = arith.constant 0 : index
    %c0_36 = arith.constant 0 : index
    %88 = vector.load %arg9[%87, %c0_35, %c0_36] : memref<8x8x384xf32, #tpu.memory_space<vmem>>, vector<1x8x384xf32>
    %89 = vector.shape_cast %88 : vector<1x8x384xf32> to vector<8x384xf32>
    %90 = vector.extract_strided_slice %12 {offsets = [0, 0], sizes = [128, 128], strides = [1, 1]} : vector<128x384xf32> to vector<128x128xf32>
    %cst_37 = arith.constant dense<0.000000e+00> : vector<8x128xf32>
    %91 = tpu.matmul %82, %90, %cst_37 {dimension_numbers = #tpu.dot_dimension_numbers<[1], [0], [0], [1], [0, 0, 1, 1], [], []>} : vector<8x128xf32>, vector<128x128xf32>, vector<8x128xf32> -> vector<8x128xf32>
    %92 = vector.extract_strided_slice %12 {offsets = [0, 256], sizes = [128, 128], strides = [1, 1]} : vector<128x384xf32> to vector<128x128xf32>
    %cst_38 = arith.constant dense<0.000000e+00> : vector<8x128xf32>
    %93 = tpu.matmul %82, %92, %cst_38 {dimension_numbers = #tpu.dot_dimension_numbers<[1], [0], [0], [1], [0, 0, 1, 1], [], []>} : vector<8x128xf32>, vector<128x128xf32>, vector<8x128xf32> -> vector<8x128xf32>
    %94 = vector.extract_strided_slice %12 {offsets = [0, 128], sizes = [128, 128], strides = [1, 1]} : vector<128x384xf32> to vector<128x128xf32>
    %cst_39 = arith.constant dense<0.000000e+00> : vector<8x128xf32>
    %95 = tpu.matmul %82, %94, %cst_39 {dimension_numbers = #tpu.dot_dimension_numbers<[1], [0], [0], [1], [0, 0, 1, 1], [], []>} : vector<8x128xf32>, vector<128x128xf32>, vector<8x128xf32> -> vector<8x128xf32>
    %96 = vector.extract_strided_slice %89 {offsets = [0, 0], sizes = [8, 128], strides = [1, 1]} : vector<8x384xf32> to vector<8x128xf32>
    %97 = arith.addf %96, %91 : vector<8x128xf32>
    %98 = arith.negf %97 : vector<8x128xf32>
    %99 = math.exp %98 : vector<8x128xf32>
    %cst_40 = arith.constant 1.000000e+00 : f32
    %100 = vector.broadcast %cst_40 : f32 to vector<8x128xf32>
    %101 = arith.addf %100, %99 : vector<8x128xf32>
    %102 = arith.divf %100, %101 : vector<8x128xf32>
    %103 = vector.extract_strided_slice %89 {offsets = [0, 128], sizes = [8, 128], strides = [1, 1]} : vector<8x384xf32> to vector<8x128xf32>
    %104 = arith.addf %103, %95 : vector<8x128xf32>
    %105 = arith.negf %104 : vector<8x128xf32>
    %106 = math.exp %105 : vector<8x128xf32>
    %cst_41 = arith.constant 1.000000e+00 : f32
    %107 = vector.broadcast %cst_41 : f32 to vector<8x128xf32>
    %108 = arith.addf %107, %106 : vector<8x128xf32>
    %109 = arith.divf %107, %108 : vector<8x128xf32>
    %110 = vector.extract_strided_slice %89 {offsets = [0, 256], sizes = [8, 128], strides = [1, 1]} : vector<8x384xf32> to vector<8x128xf32>
    %111 = arith.addf %93, %15 : vector<8x128xf32>
    %112 = arith.mulf %102, %111 : vector<8x128xf32>
    %113 = arith.addf %110, %112 : vector<8x128xf32>
    %114 = math.tanh %113 : vector<8x128xf32>
    %115 = arith.subf %82, %114 : vector<8x128xf32>
    %116 = arith.mulf %109, %115 : vector<8x128xf32>
    %117 = arith.addf %114, %116 : vector<8x128xf32>
    %118 = arith.index_cast %c2_i32 : i32 to index
    %c0_42 = arith.constant 0 : index
    %c0_43 = arith.constant 0 : index
    %119 = vector.load %arg7[%118, %c0_42, %c0_43] : memref<8x8x128xf32, #tpu.memory_space<vmem>>, vector<1x8x128xf32>
    %120 = vector.shape_cast %119 : vector<1x8x128xf32> to vector<8x128xf32>
    %121 = vector.shape_cast %117 : vector<8x128xf32> to vector<1x8x128xf32>
    tpu.vector_store %arg7[%118, %c0_42, %c0_43], %121 {strides = array<i32>} : memref<8x8x128xf32, #tpu.memory_space<vmem>>, vector<1x8x128xf32>,
    %c3_i32 = arith.constant 3 : i32
    %122 = arith.index_cast %c3_i32 : i32 to index
    %c0_44 = arith.constant 0 : index
    %c0_45 = arith.constant 0 : index
    %123 = vector.load %arg9[%122, %c0_44, %c0_45] : memref<8x8x384xf32, #tpu.memory_space<vmem>>, vector<1x8x384xf32>
    %124 = vector.shape_cast %123 : vector<1x8x384xf32> to vector<8x384xf32>
    %125 = vector.extract_strided_slice %12 {offsets = [0, 0], sizes = [128, 128], strides = [1, 1]} : vector<128x384xf32> to vector<128x128xf32>
    %cst_46 = arith.constant dense<0.000000e+00> : vector<8x128xf32>
    %126 = tpu.matmul %117, %125, %cst_46 {dimension_numbers = #tpu.dot_dimension_numbers<[1], [0], [0], [1], [0, 0, 1, 1], [], []>} : vector<8x128xf32>, vector<128x128xf32>, vector<8x128xf32> -> vector<8x128xf32>
    %127 = vector.extract_strided_slice %12 {offsets = [0, 256], sizes = [128, 128], strides = [1, 1]} : vector<128x384xf32> to vector<128x128xf32>
    %cst_47 = arith.constant dense<0.000000e+00> : vector<8x128xf32>
    %128 = tpu.matmul %117, %127, %cst_47 {dimension_numbers = #tpu.dot_dimension_numbers<[1], [0], [0], [1], [0, 0, 1, 1], [], []>} : vector<8x128xf32>, vector<128x128xf32>, vector<8x128xf32> -> vector<8x128xf32>
    %129 = vector.extract_strided_slice %12 {offsets = [0, 128], sizes = [128, 128], strides = [1, 1]} : vector<128x384xf32> to vector<128x128xf32>
    %cst_48 = arith.constant dense<0.000000e+00> : vector<8x128xf32>
    %130 = tpu.matmul %117, %129, %cst_48 {dimension_numbers = #tpu.dot_dimension_numbers<[1], [0], [0], [1], [0, 0, 1, 1], [], []>} : vector<8x128xf32>, vector<128x128xf32>, vector<8x128xf32> -> vector<8x128xf32>
    %131 = vector.extract_strided_slice %124 {offsets = [0, 0], sizes = [8, 128], strides = [1, 1]} : vector<8x384xf32> to vector<8x128xf32>
    %132 = arith.addf %131, %126 : vector<8x128xf32>
    %133 = arith.negf %132 : vector<8x128xf32>
    %134 = math.exp %133 : vector<8x128xf32>
    %cst_49 = arith.constant 1.000000e+00 : f32
    %135 = vector.broadcast %cst_49 : f32 to vector<8x128xf32>
    %136 = arith.addf %135, %134 : vector<8x128xf32>
    %137 = arith.divf %135, %136 : vector<8x128xf32>
    %138 = vector.extract_strided_slice %124 {offsets = [0, 128], sizes = [8, 128], strides = [1, 1]} : vector<8x384xf32> to vector<8x128xf32>
    %139 = arith.addf %138, %130 : vector<8x128xf32>
    %140 = arith.negf %139 : vector<8x128xf32>
    %141 = math.exp %140 : vector<8x128xf32>
    %cst_50 = arith.constant 1.000000e+00 : f32
    %142 = vector.broadcast %cst_50 : f32 to vector<8x128xf32>
    %143 = arith.addf %142, %141 : vector<8x128xf32>
    %144 = arith.divf %142, %143 : vector<8x128xf32>
    %145 = vector.extract_strided_slice %124 {offsets = [0, 256], sizes = [8, 128], strides = [1, 1]} : vector<8x384xf32> to vector<8x128xf32>
    %146 = arith.addf %128, %15 : vector<8x128xf32>
    %147 = arith.mulf %137, %146 : vector<8x128xf32>
    %148 = arith.addf %145, %147 : vector<8x128xf32>
    %149 = math.tanh %148 : vector<8x128xf32>
    %150 = arith.subf %117, %149 : vector<8x128xf32>
    %151 = arith.mulf %144, %150 : vector<8x128xf32>
    %152 = arith.addf %149, %151 : vector<8x128xf32>
    %153 = arith.index_cast %c3_i32 : i32 to index
    %c0_51 = arith.constant 0 : index
    %c0_52 = arith.constant 0 : index
    %154 = vector.load %arg7[%153, %c0_51, %c0_52] : memref<8x8x128xf32, #tpu.memory_space<vmem>>, vector<1x8x128xf32>
    %155 = vector.shape_cast %154 : vector<1x8x128xf32> to vector<8x128xf32>
    %156 = vector.shape_cast %152 : vector<8x128xf32> to vector<1x8x128xf32>
    tpu.vector_store %arg7[%153, %c0_51, %c0_52], %156 {strides = array<i32>} : memref<8x8x128xf32, #tpu.memory_space<vmem>>, vector<1x8x128xf32>,
    %c4_i32 = arith.constant 4 : i32
    %157 = arith.index_cast %c4_i32 : i32 to index
    %c0_53 = arith.constant 0 : index
    %c0_54 = arith.constant 0 : index
    %158 = vector.load %arg9[%157, %c0_53, %c0_54] : memref<8x8x384xf32, #tpu.memory_space<vmem>>, vector<1x8x384xf32>
    %159 = vector.shape_cast %158 : vector<1x8x384xf32> to vector<8x384xf32>
    %160 = vector.extract_strided_slice %12 {offsets = [0, 0], sizes = [128, 128], strides = [1, 1]} : vector<128x384xf32> to vector<128x128xf32>
    %cst_55 = arith.constant dense<0.000000e+00> : vector<8x128xf32>
    %161 = tpu.matmul %152, %160, %cst_55 {dimension_numbers = #tpu.dot_dimension_numbers<[1], [0], [0], [1], [0, 0, 1, 1], [], []>} : vector<8x128xf32>, vector<128x128xf32>, vector<8x128xf32> -> vector<8x128xf32>
    %162 = vector.extract_strided_slice %12 {offsets = [0, 256], sizes = [128, 128], strides = [1, 1]} : vector<128x384xf32> to vector<128x128xf32>
    %cst_56 = arith.constant dense<0.000000e+00> : vector<8x128xf32>
    %163 = tpu.matmul %152, %162, %cst_56 {dimension_numbers = #tpu.dot_dimension_numbers<[1], [0], [0], [1], [0, 0, 1, 1], [], []>} : vector<8x128xf32>, vector<128x128xf32>, vector<8x128xf32> -> vector<8x128xf32>
    %164 = vector.extract_strided_slice %12 {offsets = [0, 128], sizes = [128, 128], strides = [1, 1]} : vector<128x384xf32> to vector<128x128xf32>
    %cst_57 = arith.constant dense<0.000000e+00> : vector<8x128xf32>
    %165 = tpu.matmul %152, %164, %cst_57 {dimension_numbers = #tpu.dot_dimension_numbers<[1], [0], [0], [1], [0, 0, 1, 1], [], []>} : vector<8x128xf32>, vector<128x128xf32>, vector<8x128xf32> -> vector<8x128xf32>
    %166 = vector.extract_strided_slice %159 {offsets = [0, 0], sizes = [8, 128], strides = [1, 1]} : vector<8x384xf32> to vector<8x128xf32>
    %167 = arith.addf %166, %161 : vector<8x128xf32>
    %168 = arith.negf %167 : vector<8x128xf32>
    %169 = math.exp %168 : vector<8x128xf32>
    %cst_58 = arith.constant 1.000000e+00 : f32
    %170 = vector.broadcast %cst_58 : f32 to vector<8x128xf32>
    %171 = arith.addf %170, %169 : vector<8x128xf32>
    %172 = arith.divf %170, %171 : vector<8x128xf32>
    %173 = vector.extract_strided_slice %159 {offsets = [0, 128], sizes = [8, 128], strides = [1, 1]} : vector<8x384xf32> to vector<8x128xf32>
    %174 = arith.addf %173, %165 : vector<8x128xf32>
    %175 = arith.negf %174 : vector<8x128xf32>
    %176 = math.exp %175 : vector<8x128xf32>
    %cst_59 = arith.constant 1.000000e+00 : f32
    %177 = vector.broadcast %cst_59 : f32 to vector<8x128xf32>
    %178 = arith.addf %177, %176 : vector<8x128xf32>
    %179 = arith.divf %177, %178 : vector<8x128xf32>
    %180 = vector.extract_strided_slice %159 {offsets = [0, 256], sizes = [8, 128], strides = [1, 1]} : vector<8x384xf32> to vector<8x128xf32>
    %181 = arith.addf %163, %15 : vector<8x128xf32>
    %182 = arith.mulf %172, %181 : vector<8x128xf32>
    %183 = arith.addf %180, %182 : vector<8x128xf32>
    %184 = math.tanh %183 : vector<8x128xf32>
    %185 = arith.subf %152, %184 : vector<8x128xf32>
    %186 = arith.mulf %179, %185 : vector<8x128xf32>
    %187 = arith.addf %184, %186 : vector<8x128xf32>
    %188 = arith.index_cast %c4_i32 : i32 to index
    %c0_60 = arith.constant 0 : index
    %c0_61 = arith.constant 0 : index
    %189 = vector.load %arg7[%188, %c0_60, %c0_61] : memref<8x8x128xf32, #tpu.memory_space<vmem>>, vector<1x8x128xf32>
    %190 = vector.shape_cast %189 : vector<1x8x128xf32> to vector<8x128xf32>
    %191 = vector.shape_cast %187 : vector<8x128xf32> to vector<1x8x128xf32>
    tpu.vector_store %arg7[%188, %c0_60, %c0_61], %191 {strides = array<i32>} : memref<8x8x128xf32, #tpu.memory_space<vmem>>, vector<1x8x128xf32>,
    %c5_i32 = arith.constant 5 : i32
    %192 = arith.index_cast %c5_i32 : i32 to index
    %c0_62 = arith.constant 0 : index
    %c0_63 = arith.constant 0 : index
    %193 = vector.load %arg9[%192, %c0_62, %c0_63] : memref<8x8x384xf32, #tpu.memory_space<vmem>>, vector<1x8x384xf32>
    %194 = vector.shape_cast %193 : vector<1x8x384xf32> to vector<8x384xf32>
    %195 = vector.extract_strided_slice %12 {offsets = [0, 0], sizes = [128, 128], strides = [1, 1]} : vector<128x384xf32> to vector<128x128xf32>
    %cst_64 = arith.constant dense<0.000000e+00> : vector<8x128xf32>
    %196 = tpu.matmul %187, %195, %cst_64 {dimension_numbers = #tpu.dot_dimension_numbers<[1], [0], [0], [1], [0, 0, 1, 1], [], []>} : vector<8x128xf32>, vector<128x128xf32>, vector<8x128xf32> -> vector<8x128xf32>
    %197 = vector.extract_strided_slice %12 {offsets = [0, 256], sizes = [128, 128], strides = [1, 1]} : vector<128x384xf32> to vector<128x128xf32>
    %cst_65 = arith.constant dense<0.000000e+00> : vector<8x128xf32>
    %198 = tpu.matmul %187, %197, %cst_65 {dimension_numbers = #tpu.dot_dimension_numbers<[1], [0], [0], [1], [0, 0, 1, 1], [], []>} : vector<8x128xf32>, vector<128x128xf32>, vector<8x128xf32> -> vector<8x128xf32>
    %199 = vector.extract_strided_slice %12 {offsets = [0, 128], sizes = [128, 128], strides = [1, 1]} : vector<128x384xf32> to vector<128x128xf32>
    %cst_66 = arith.constant dense<0.000000e+00> : vector<8x128xf32>
    %200 = tpu.matmul %187, %199, %cst_66 {dimension_numbers = #tpu.dot_dimension_numbers<[1], [0], [0], [1], [0, 0, 1, 1], [], []>} : vector<8x128xf32>, vector<128x128xf32>, vector<8x128xf32> -> vector<8x128xf32>
    %201 = vector.extract_strided_slice %194 {offsets = [0, 0], sizes = [8, 128], strides = [1, 1]} : vector<8x384xf32> to vector<8x128xf32>
    %202 = arith.addf %201, %196 : vector<8x128xf32>
    %203 = arith.negf %202 : vector<8x128xf32>
    %204 = math.exp %203 : vector<8x128xf32>
    %cst_67 = arith.constant 1.000000e+00 : f32
    %205 = vector.broadcast %cst_67 : f32 to vector<8x128xf32>
    %206 = arith.addf %205, %204 : vector<8x128xf32>
    %207 = arith.divf %205, %206 : vector<8x128xf32>
    %208 = vector.extract_strided_slice %194 {offsets = [0, 128], sizes = [8, 128], strides = [1, 1]} : vector<8x384xf32> to vector<8x128xf32>
    %209 = arith.addf %208, %200 : vector<8x128xf32>
    %210 = arith.negf %209 : vector<8x128xf32>
    %211 = math.exp %210 : vector<8x128xf32>
    %cst_68 = arith.constant 1.000000e+00 : f32
    %212 = vector.broadcast %cst_68 : f32 to vector<8x128xf32>
    %213 = arith.addf %212, %211 : vector<8x128xf32>
    %214 = arith.divf %212, %213 : vector<8x128xf32>
    %215 = vector.extract_strided_slice %194 {offsets = [0, 256], sizes = [8, 128], strides = [1, 1]} : vector<8x384xf32> to vector<8x128xf32>
    %216 = arith.addf %198, %15 : vector<8x128xf32>
    %217 = arith.mulf %207, %216 : vector<8x128xf32>
    %218 = arith.addf %215, %217 : vector<8x128xf32>
    %219 = math.tanh %218 : vector<8x128xf32>
    %220 = arith.subf %187, %219 : vector<8x128xf32>
    %221 = arith.mulf %214, %220 : vector<8x128xf32>
    %222 = arith.addf %219, %221 : vector<8x128xf32>
    %223 = arith.index_cast %c5_i32 : i32 to index
    %c0_69 = arith.constant 0 : index
    %c0_70 = arith.constant 0 : index
    %224 = vector.load %arg7[%223, %c0_69, %c0_70] : memref<8x8x128xf32, #tpu.memory_space<vmem>>, vector<1x8x128xf32>
    %225 = vector.shape_cast %224 : vector<1x8x128xf32> to vector<8x128xf32>
    %226 = vector.shape_cast %222 : vector<8x128xf32> to vector<1x8x128xf32>
    tpu.vector_store %arg7[%223, %c0_69, %c0_70], %226 {strides = array<i32>} : memref<8x8x128xf32, #tpu.memory_space<vmem>>, vector<1x8x128xf32>,
    %c6_i32 = arith.constant 6 : i32
    %227 = arith.index_cast %c6_i32 : i32 to index
    %c0_71 = arith.constant 0 : index
    %c0_72 = arith.constant 0 : index
    %228 = vector.load %arg9[%227, %c0_71, %c0_72] : memref<8x8x384xf32, #tpu.memory_space<vmem>>, vector<1x8x384xf32>
    %229 = vector.shape_cast %228 : vector<1x8x384xf32> to vector<8x384xf32>
    %230 = vector.extract_strided_slice %12 {offsets = [0, 0], sizes = [128, 128], strides = [1, 1]} : vector<128x384xf32> to vector<128x128xf32>
    %cst_73 = arith.constant dense<0.000000e+00> : vector<8x128xf32>
    %231 = tpu.matmul %222, %230, %cst_73 {dimension_numbers = #tpu.dot_dimension_numbers<[1], [0], [0], [1], [0, 0, 1, 1], [], []>} : vector<8x128xf32>, vector<128x128xf32>, vector<8x128xf32> -> vector<8x128xf32>
    %232 = vector.extract_strided_slice %12 {offsets = [0, 256], sizes = [128, 128], strides = [1, 1]} : vector<128x384xf32> to vector<128x128xf32>
    %cst_74 = arith.constant dense<0.000000e+00> : vector<8x128xf32>
    %233 = tpu.matmul %222, %232, %cst_74 {dimension_numbers = #tpu.dot_dimension_numbers<[1], [0], [0], [1], [0, 0, 1, 1], [], []>} : vector<8x128xf32>, vector<128x128xf32>, vector<8x128xf32> -> vector<8x128xf32>
    %234 = vector.extract_strided_slice %12 {offsets = [0, 128], sizes = [128, 128], strides = [1, 1]} : vector<128x384xf32> to vector<128x128xf32>
    %cst_75 = arith.constant dense<0.000000e+00> : vector<8x128xf32>
    %235 = tpu.matmul %222, %234, %cst_75 {dimension_numbers = #tpu.dot_dimension_numbers<[1], [0], [0], [1], [0, 0, 1, 1], [], []>} : vector<8x128xf32>, vector<128x128xf32>, vector<8x128xf32> -> vector<8x128xf32>
    %236 = vector.extract_strided_slice %229 {offsets = [0, 0], sizes = [8, 128], strides = [1, 1]} : vector<8x384xf32> to vector<8x128xf32>
    %237 = arith.addf %236, %231 : vector<8x128xf32>
    %238 = arith.negf %237 : vector<8x128xf32>
    %239 = math.exp %238 : vector<8x128xf32>
    %cst_76 = arith.constant 1.000000e+00 : f32
    %240 = vector.broadcast %cst_76 : f32 to vector<8x128xf32>
    %241 = arith.addf %240, %239 : vector<8x128xf32>
    %242 = arith.divf %240, %241 : vector<8x128xf32>
    %243 = vector.extract_strided_slice %229 {offsets = [0, 128], sizes = [8, 128], strides = [1, 1]} : vector<8x384xf32> to vector<8x128xf32>
    %244 = arith.addf %243, %235 : vector<8x128xf32>
    %245 = arith.negf %244 : vector<8x128xf32>
    %246 = math.exp %245 : vector<8x128xf32>
    %cst_77 = arith.constant 1.000000e+00 : f32
    %247 = vector.broadcast %cst_77 : f32 to vector<8x128xf32>
    %248 = arith.addf %247, %246 : vector<8x128xf32>
    %249 = arith.divf %247, %248 : vector<8x128xf32>
    %250 = vector.extract_strided_slice %229 {offsets = [0, 256], sizes = [8, 128], strides = [1, 1]} : vector<8x384xf32> to vector<8x128xf32>
    %251 = arith.addf %233, %15 : vector<8x128xf32>
    %252 = arith.mulf %242, %251 : vector<8x128xf32>
    %253 = arith.addf %250, %252 : vector<8x128xf32>
    %254 = math.tanh %253 : vector<8x128xf32>
    %255 = arith.subf %222, %254 : vector<8x128xf32>
    %256 = arith.mulf %249, %255 : vector<8x128xf32>
    %257 = arith.addf %254, %256 : vector<8x128xf32>
    %258 = arith.index_cast %c6_i32 : i32 to index
    %c0_78 = arith.constant 0 : index
    %c0_79 = arith.constant 0 : index
    %259 = vector.load %arg7[%258, %c0_78, %c0_79] : memref<8x8x128xf32, #tpu.memory_space<vmem>>, vector<1x8x128xf32>
    %260 = vector.shape_cast %259 : vector<1x8x128xf32> to vector<8x128xf32>
    %261 = vector.shape_cast %257 : vector<8x128xf32> to vector<1x8x128xf32>
    tpu.vector_store %arg7[%258, %c0_78, %c0_79], %261 {strides = array<i32>} : memref<8x8x128xf32, #tpu.memory_space<vmem>>, vector<1x8x128xf32>,
    %c7_i32 = arith.constant 7 : i32
    %262 = arith.index_cast %c7_i32 : i32 to index
    %c0_80 = arith.constant 0 : index
    %c0_81 = arith.constant 0 : index
    %263 = vector.load %arg9[%262, %c0_80, %c0_81] : memref<8x8x384xf32, #tpu.memory_space<vmem>>, vector<1x8x384xf32>
    %264 = vector.shape_cast %263 : vector<1x8x384xf32> to vector<8x384xf32>
    %265 = vector.extract_strided_slice %12 {offsets = [0, 0], sizes = [128, 128], strides = [1, 1]} : vector<128x384xf32> to vector<128x128xf32>
    %cst_82 = arith.constant dense<0.000000e+00> : vector<8x128xf32>
    %266 = tpu.matmul %257, %265, %cst_82 {dimension_numbers = #tpu.dot_dimension_numbers<[1], [0], [0], [1], [0, 0, 1, 1], [], []>} : vector<8x128xf32>, vector<128x128xf32>, vector<8x128xf32> -> vector<8x128xf32>
    %267 = vector.extract_strided_slice %12 {offsets = [0, 256], sizes = [128, 128], strides = [1, 1]} : vector<128x384xf32> to vector<128x128xf32>
    %cst_83 = arith.constant dense<0.000000e+00> : vector<8x128xf32>
    %268 = tpu.matmul %257, %267, %cst_83 {dimension_numbers = #tpu.dot_dimension_numbers<[1], [0], [0], [1], [0, 0, 1, 1], [], []>} : vector<8x128xf32>, vector<128x128xf32>, vector<8x128xf32> -> vector<8x128xf32>
    %269 = vector.extract_strided_slice %12 {offsets = [0, 128], sizes = [128, 128], strides = [1, 1]} : vector<128x384xf32> to vector<128x128xf32>
    %cst_84 = arith.constant dense<0.000000e+00> : vector<8x128xf32>
    %270 = tpu.matmul %257, %269, %cst_84 {dimension_numbers = #tpu.dot_dimension_numbers<[1], [0], [0], [1], [0, 0, 1, 1], [], []>} : vector<8x128xf32>, vector<128x128xf32>, vector<8x128xf32> -> vector<8x128xf32>
    %271 = vector.extract_strided_slice %264 {offsets = [0, 0], sizes = [8, 128], strides = [1, 1]} : vector<8x384xf32> to vector<8x128xf32>
    %272 = arith.addf %271, %266 : vector<8x128xf32>
    %273 = arith.negf %272 : vector<8x128xf32>
    %274 = math.exp %273 : vector<8x128xf32>
    %cst_85 = arith.constant 1.000000e+00 : f32
    %275 = vector.broadcast %cst_85 : f32 to vector<8x128xf32>
    %276 = arith.addf %275, %274 : vector<8x128xf32>
    %277 = arith.divf %275, %276 : vector<8x128xf32>
    %278 = vector.extract_strided_slice %264 {offsets = [0, 128], sizes = [8, 128], strides = [1, 1]} : vector<8x384xf32> to vector<8x128xf32>
    %279 = arith.addf %278, %270 : vector<8x128xf32>
    %280 = arith.negf %279 : vector<8x128xf32>
    %281 = math.exp %280 : vector<8x128xf32>
    %cst_86 = arith.constant 1.000000e+00 : f32
    %282 = vector.broadcast %cst_86 : f32 to vector<8x128xf32>
    %283 = arith.addf %282, %281 : vector<8x128xf32>
    %284 = arith.divf %282, %283 : vector<8x128xf32>
    %285 = vector.extract_strided_slice %264 {offsets = [0, 256], sizes = [8, 128], strides = [1, 1]} : vector<8x384xf32> to vector<8x128xf32>
    %286 = arith.addf %268, %15 : vector<8x128xf32>
    %287 = arith.mulf %277, %286 : vector<8x128xf32>
    %288 = arith.addf %285, %287 : vector<8x128xf32>
    %289 = math.tanh %288 : vector<8x128xf32>
    %290 = arith.subf %257, %289 : vector<8x128xf32>
    %291 = arith.mulf %284, %290 : vector<8x128xf32>
    %292 = arith.addf %289, %291 : vector<8x128xf32>
    %293 = arith.index_cast %c7_i32 : i32 to index
    %c0_87 = arith.constant 0 : index
    %c0_88 = arith.constant 0 : index
    %294 = vector.load %arg7[%293, %c0_87, %c0_88] : memref<8x8x128xf32, #tpu.memory_space<vmem>>, vector<1x8x128xf32>
    %295 = vector.shape_cast %294 : vector<1x8x128xf32> to vector<8x128xf32>
    %296 = vector.shape_cast %292 : vector<8x128xf32> to vector<1x8x128xf32>
    tpu.vector_store %arg7[%293, %c0_87, %c0_88], %296 {strides = array<i32>} : memref<8x8x128xf32, #tpu.memory_space<vmem>>, vector<1x8x128xf32>,
    %c8_i32 = arith.constant 8 : i32
    %c0_89 = arith.constant 0 : index
    %c0_90 = arith.constant 0 : index
    %297 = vector.load %arg8[%c0_89, %c0_90] : memref<8x128xf32, #tpu.memory_space<vmem>>, vector<8x128xf32>
    tpu.vector_store %arg8[%c0_89, %c0_90], %292 {strides = array<i32>} : memref<8x128xf32, #tpu.memory_space<vmem>>, vector<8x128xf32>,
    return
  }
  func.func @transform_0(%arg0: i32, %arg1: i32) -> (i32, i32, i32) {
    %c0_i32 = arith.constant 0 : i32
    %c0_i32_0 = arith.constant 0 : i32
    return %arg1, %arg0, %c0_i32 : i32, i32, i32
  }
  func.func @transform_1(%arg0: i32, %arg1: i32) -> (i32, i32) {
    %c0_i32 = arith.constant 0 : i32
    %c0_i32_0 = arith.constant 0 : i32
    %c0_i32_1 = arith.constant 0 : i32
    return %c0_i32, %c0_i32_0 : i32, i32
  }
  func.func @transform_2(%arg0: i32, %arg1: i32) -> (i32, i32) {
    %c0_i32 = arith.constant 0 : i32
    %c0_i32_0 = arith.constant 0 : i32
    %c0_i32_1 = arith.constant 0 : i32
    return %c0_i32, %c0_i32_0 : i32, i32
  }
  func.func @transform_3(%arg0: i32, %arg1: i32) -> (i32, i32) {
    %c0_i32 = arith.constant 0 : i32
    %c0_i32_0 = arith.constant 0 : i32
    %c0_i32_1 = arith.constant 0 : i32
    return %c0_i32, %c0_i32_0 : i32, i32
  }
  func.func @transform_4(%arg0: i32, %arg1: i32) -> (i32, i32) {
    %c0_i32 = arith.constant 0 : i32
    %c0_i32_0 = arith.constant 0 : i32
    %c0_i32_1 = arith.constant 0 : i32
    return %c0_i32, %c0_i32_0 : i32, i32
  }
  func.func @transform_5(%arg0: i32, %arg1: i32) -> (i32, i32, i32) {
    %c0_i32 = arith.constant 0 : i32
    %c0_i32_0 = arith.constant 0 : i32
    return %arg1, %arg0, %c0_i32 : i32, i32, i32
  }
}

</mosaic_0001>

<bundles_post_ra>
// kernel: tpu_custom_call.1
= control target key start
LH: loop header
LB: loop body
LE: loop exit
PB: predicated region body
PF: predicated region fallthrough
CT: control target
= control target key end

     0   :  { %10 = vsyncpa [#allocation5], 0  ;;  %s5230_s0 = inlined_call_operand.hbm [shape: f32[8,8,128], index: 0, kind: input, shape index: {}]   ;;  %s5231_s1 = inlined_call_operand.hbm [shape: f32[128,384], index: 1, kind: input, shape index: {}]   ;;  %s5232_s2 = inlined_call_operand.hbm [shape: f32[128,384], index: 2, kind: input, shape index: {}]   ;;  %s5233_s3 = inlined_call_operand.vmem [shape: f32[1,384], index: 3, kind: input, shape index: {}]   ;;  %s5234_s4 = inlined_call_operand.vmem [shape: f32[1,128], index: 4, kind: input, shape index: {}]   ;;  %s5235_s5 = inlined_call_operand.hbm [shape: f32[8,8,128], index: 5, kind: output, shape index: {}]  }
   0x1   :  { %11 = vsyncpa [#allocation8], 0 }
   0x2   :  { %12 = vsyncpa [#allocation6], 0  ;;  %s4502_s18 = smov [#allocation7]   ;;  %s4408_s22 = scalar_lea.hbm %s5231_s1, 6144 }
   0x3   :  { %s30_s19 = sshll.u32 %s4502_s18, 4  ;;  %p4409_p0 = scmp.ne.s32.totalorder %s5231_s1, %s4408_s22  ;;  %s31_s19 = int_to_ptr.vmem [resolvable:$true] %s30_s19 }
   0x4   :  { %p4412_p1 = scmp.lt.u32.totalorder %s4408_s22, %s5231_s1 }
   0x6   :  { %p4414_p2 = pnand %p4412_p1, %p4409_p0 }
   0x8   :  { %4417 = shalt.err (!%p4414_p2)
}
   0x9   :  { %s4418_s27 = scalar_lea.vmem %s31_s19, 6144  ;;  %p4423_p4 = scmp.lt.s32.totalorder %s31_s19, %s31_s19 }
   0xa   :  { %p4419_p3 = scmp.ne.s32.totalorder %s31_s19, %s4418_s27  ;;  %p4424_p5 = scmp.lt.s32.totalorder %s4418_s27, %s4418_s27 }
   0xc   :  { %p4425_p6 = por %p4424_p5, %p4423_p4 }
   0xe   :  { %p4426_p7 = pnand %p4425_p6, %p4419_p3 }
  0x10   :  { %4429 = shalt.err (!%p4426_p7)
}
  0x11   :  { %s4503_s28 = smov 384   ;;  %s4504_s29 = smov 24  }
  0x12   :  { %36 = dma.hbm_to_vmem [thread:$0]  %s5231_s1, 6144, %s31_s19, [#allocation8], %s4503_s28, %s4503_s28, %s4504_s29  }
  0x13   :  { %s4505_s7 = smov [#allocation4]   ;;  %s4430_s11 = scalar_lea.hbm %s5230_s0, 1024 }
  0x14   :  { %s18_s8 = sshll.u32 %s4505_s7, 4  ;;  %p4431_p8 = scmp.ne.s32.totalorder %s5230_s0, %s4430_s11  ;;  %s19_s8 = int_to_ptr.vmem [resolvable:$true] %s18_s8 }
  0x15   :  { %p4434_p9 = scmp.lt.u32.totalorder %s4430_s11, %s5230_s0 }
  0x17   :  { %p4436_p10 = pnand %p4434_p9, %p4431_p8 }
  0x19   :  { %4439 = shalt.err (!%p4436_p10)
}
  0x1a   :  { %s4440_s16 = scalar_lea.vmem %s19_s8, 1024  ;;  %p4445_p12 = scmp.lt.s32.totalorder %s19_s8, %s19_s8 }
  0x1b   :  { %p4441_p11 = scmp.ne.s32.totalorder %s19_s8, %s4440_s16  ;;  %p4446_p13 = scmp.lt.s32.totalorder %s4440_s16, %s4440_s16 }
  0x1d   :  { %p4447_p0 = por %p4446_p13, %p4445_p12 }
  0x1f   :  { %p4448_p1 = pnand %p4447_p0, %p4441_p11 }
  0x21   :  { %4451 = shalt.err (!%p4448_p1)
}
  0x22   :  { %s4506_s1 = smov 128   ;;  %s4507_s17 = smov 8  }
  0x23   :  { %24 = dma.hbm_to_vmem [thread:$0]  %s5230_s0, 1024, %s19_s8, [#allocation5], %s4506_s1, %s4506_s1, %s4507_s17  }
  0x24   :  { %s4508_s20 = smov [#allocation9]   ;;  %s4452_s24 = scalar_lea.hbm %s5232_s2, 6144 }
  0x25   :  { %s42_s21 = sshll.u32 %s4508_s20, 4  ;;  %p4453_p2 = scmp.ne.s32.totalorder %s5232_s2, %s4452_s24  ;;  %s43_s21 = int_to_ptr.vmem [resolvable:$true] %s42_s21 }
  0x26   :  { %p4456_p3 = scmp.lt.u32.totalorder %s4452_s24, %s5232_s2 }
  0x28   :  { %p4458_p4 = pnand %p4456_p3, %p4453_p2 }
  0x2a   :  { %4461 = shalt.err (!%p4458_p4)
}
  0x2b   :  { %s4462_s6 = scalar_lea.vmem %s43_s21, 6144  ;;  %p4467_p6 = scmp.lt.s32.totalorder %s43_s21, %s43_s21 }
  0x2c   :  { %p4463_p5 = scmp.ne.s32.totalorder %s43_s21, %s4462_s6  ;;  %p4468_p7 = scmp.lt.s32.totalorder %s4462_s6, %s4462_s6 }
  0x2e   :  { %p4469_p8 = por %p4468_p7, %p4467_p6 }
  0x30   :  { %p4470_p9 = pnand %p4469_p8, %p4463_p5 }
  0x32   :  { %4473 = shalt.err (!%p4470_p9)
}
  0x33   :  { %48 = dma.hbm_to_vmem [thread:$0]  %s5232_s2, 6144, %s43_s21, [#allocation8], %s4503_s28, %s4503_s28, %s4504_s29  }
  0x34   :  { %4496 = dma.done.wait [#allocation5], 1024  }
  0x35   :  { %4497 = vsyncadd [#allocation5], 4294966272 }
  0x36   :  { %4498 = dma.done.wait [#allocation8], 12288  }
  0x37   :  { %4499 = vsyncadd [#allocation8], 4294955008  ;;  %v5238_v0 = vmov 0.0   ;;  %v76_v1 = vld [vmem:[#allocation7 + $0x8] sm:$0xff]  ;;  %v79_v2 = vld [vmem:[#allocation7 + $0x20] sm:$0xff]  ;;  %vm4511_vm0 = vmmov 0  }
  0x38   :  { %204 = vmatprep.mubr.f32.mxu0 %v5238_v0  ;;  %v77_v3 = vld [vmem:[#allocation7 + $0x10] sm:$0xff]  ;;  %v3676_v4 = vpack.c.bf16 %v79_v2, %v76_v1  ;;  %v80_v5 = vld [vmem:[#allocation7 + $0x28] sm:$0xff]  ;;  %v75_v6 = vld [vmem:[#allocation7] sm:$0xff]  ;;  %s4512_s10 = smov [#allocation10]  }
  0x39   :  { %v78_v7 = vld [vmem:[#allocation7 + $0x18] sm:$0xff]  ;;  %v3708_v8 = vpack.c.bf16 %v80_v5, %v77_v3  ;;  %v85_v11 = vld [vmem:[#allocation7 + $0x50] sm:$0xff]  ;;  %v83_v12 = vld [vmem:[#allocation7 + $0x40] sm:$0xff]  ;;  %s2330_s11 = sshll.u32 %s4512_s10, 4  ;;  %s2331_s11 = int_to_ptr.vmem [resolvable:$true] %s2330_s11 }
  0x3a   :  { %v3678_v9 = vpack.c.bf16 %v78_v7, %v75_v6  ;;  %v82_v10 = vld [vmem:[#allocation7 + $0x38] sm:$0xff]  ;;  %3677 = vmatprep.subr.bf16.mxu0 %v3676_v4  ;;  %v81_v15 = vld [vmem:[#allocation7 + $0x30] sm:$0xff]  ;;  %v84_v16 = vld [vmem:[#allocation7 + $0x48] sm:$0xff]  ;;  %s4474_s12 = scalar_lea.vmem %s2331_s11, 1024  ;;  %p4479_p11 = scmp.lt.s32.totalorder %s2331_s11, %s2331_s11 }
  0x3b   :  { %v3680_v13 = vpack.c.bf16 %v85_v11, %v82_v10  ;;  %v86_v14 = vld [vmem:[#allocation7 + $0x58] sm:$0xff]  ;;  %3709 = vmatprep.subr.bf16.mxu1 %v3708_v8  ;;  %v3682_v18 = vpack.c.bf16 %v84_v16, %v81_v15  ;;  %v88_v19 = vld [vmem:[#allocation7 + $0x68] sm:$0xff]  ;;  %v91_v20 = vld [vmem:[#allocation7 + $0x80] sm:$0xff]  ;;  %v5236_v16 = vmov 0.0|0.0   ;;  %p4475_p10 = scmp.ne.s32.totalorder %s2331_s11, %s4474_s12  ;;  %p4480_p12 = scmp.lt.s32.totalorder %s4474_s12, %s4474_s12 }
  0x3c   :  { %3679 = vmatpush1.bf16.msra.mxu0 %v3678_v9  ;;  %v3712_v17 = vpack.c.bf16 %v86_v14, %v83_v12  ;;  %v89_v21 = vld [vmem:[#allocation7 + $0x70] sm:$0xff]  ;;  %3711 = vmatpush3.bf16.msra.mxu1 %v3708_v8  ;;  %v3684_v22 = vpack.c.bf16 %v91_v20, %v88_v19  ;;  %v92_v23 = vld [vmem:[#allocation7 + $0x88] sm:$0xff]  ;;  %v87_v24 = vld [vmem:[#allocation7 + $0x60] sm:$0xff] }
  0x3d   :  { %3681 = vmatprep.subr.bf16.mxu0 %v3680_v13  ;;  %v90_v25 = vld [vmem:[#allocation7 + $0x78] sm:$0xff]  ;;  %v3716_v26 = vpack.c.bf16 %v92_v23, %v89_v21  ;;  %v97_v28 = vld [vmem:[#allocation7 + $0xb0] sm:$0xff]  ;;  %v95_v29 = vld [vmem:[#allocation7 + $0xa0] sm:$0xff]  ;;  %p4481_p13 = por %p4480_p12, %p4479_p11 }
  0x3e   :  { %3713 = vmatprep.subr.bf16.mxu1 %v3712_v17  ;;  %v94_v27 = vld [vmem:[#allocation7 + $0x98] sm:$0xff]  ;;  %v3686_v31 = vpack.c.bf16 %v90_v25, %v87_v24  ;;  %v93_v33 = vld [vmem:[#allocation7 + $0x90] sm:$0xff]  ;;  %v96_v34 = vld [vmem:[#allocation7 + $0xa8] sm:$0xff] }
  0x3f   :  { %v98_v30 = vld [vmem:[#allocation7 + $0xb8] sm:$0xff]  ;;  %v3688_v32 = vpack.c.bf16 %v97_v28, %v94_v27  ;;  %v100_v36 = vld [vmem:[#allocation7 + $0xc8] sm:$0xff]  ;;  %v103_v37 = vld [vmem:[#allocation7 + $0xe0] sm:$0xff]  ;;  %v3690_v40 = vpack.c.bf16 %v96_v34, %v93_v33  ;;  %p4482_p0 = pnand %p4481_p13, %p4475_p10 }
  0x40   :  { %3683 = vmatpush1.bf16.msra.mxu0 %v3682_v18  ;;  %3715 = vmatpush3.bf16.msra.mxu1 %v3712_v17  ;;  %v3720_v35 = vpack.c.bf16 %v98_v30, %v95_v29  ;;  %v101_v38 = vld [vmem:[#allocation7 + $0xd0] sm:$0xff]  ;;  %v104_v39 = vld [vmem:[#allocation7 + $0xe8] sm:$0xff]  ;;  %v3692_v41 = vpack.c.bf16 %v103_v37, %v100_v36  ;;  %v99_v42 = vld [vmem:[#allocation7 + $0xc0] sm:$0xff] }
  0x41   :  { %3685 = vmatprep.subr.bf16.mxu0 %v3684_v22  ;;  %3717 = vmatprep.subr.bf16.mxu1 %v3716_v26  ;;  %v102_v43 = vld [vmem:[#allocation7 + $0xd8] sm:$0xff]  ;;  %v3724_v44 = vpack.c.bf16 %v104_v39, %v101_v38  ;;  %v109_v46 = vld [vmem:[#allocation7 + $0x110] sm:$0xff]  ;;  %v107_v47 = vld [vmem:[#allocation7 + $0x100] sm:$0xff] }
  0x42   :  { %v106_v45 = vld [vmem:[#allocation7 + $0xf8] sm:$0xff]  ;;  %v3694_v49 = vpack.c.bf16 %v102_v43, %v99_v42  ;;  %v67_v50 = vld [vmem:[#allocation4] sm:$0xff]  ;;  %v105_v52 = vld [vmem:[#allocation7 + $0xf0] sm:$0xff] }
  0x43   :  { %v110_v48 = vld [vmem:[#allocation7 + $0x118] sm:$0xff]  ;;  %v3696_v51 = vpack.c.bf16 %v109_v46, %v106_v45  ;;  %v108_v53 = vld [vmem:[#allocation7 + $0x108] sm:$0xff]  ;;  %v115_v56 = vld [vmem:[#allocation7 + $0x140] sm:$0xff]  ;;  %2824 = vmatprep.mubr.f32.mxu1 %v67_v50 }
  0x44   :  { %3687 = vmatpush1.bf16.msra.mxu0 %v3686_v31  ;;  %3719 = vmatpush3.bf16.msra.mxu1 %v3716_v26  ;;  %v3728_v54 = vpack.c.bf16 %v110_v48, %v107_v47  ;;  %v112_v55 = vld [vmem:[#allocation7 + $0x128] sm:$0xff]  ;;  %v113_v57 = vld [vmem:[#allocation7 + $0x130] sm:$0xff]  ;;  %v3698_v59 = vpack.c.bf16 %v108_v53, %v105_v52  ;;  %v111_v61 = vld [vmem:[#allocation7 + $0x120] sm:$0xff] }
  0x45   :  { %3689 = vmatprep.subr.bf16.mxu0 %v3688_v32  ;;  %3721 = vmatprep.subr.bf16.mxu1 %v3720_v35  ;;  %v116_v58 = vld [vmem:[#allocation7 + $0x148] sm:$0xff]  ;;  %v3700_v60 = vpack.c.bf16 %v115_v56, %v112_v55  ;;  %v114_v62 = vld [vmem:[#allocation7 + $0x138] sm:$0xff]  ;;  %v121_v2 = vld [vmem:[#allocation7 + $0x170] sm:$0xff] }
  0x46   :  { %v3732_v63 = vpack.c.bf16 %v116_v58, %v113_v57  ;;  %v118_v1 = vld [vmem:[#allocation7 + $0x158] sm:$0xff]  ;;  %v119_v3 = vld [vmem:[#allocation7 + $0x160] sm:$0xff]  ;;  %v3702_v5 = vpack.c.bf16 %v114_v62, %v111_v61  ;;  %v117_v7 = vld [vmem:[#allocation7 + $0x150] sm:$0xff] }
  0x47   :  { %v122_v4 = vld [vmem:[#allocation7 + $0x178] sm:$0xff]  ;;  %v3704_v6 = vpack.c.bf16 %v121_v2, %v118_v1  ;;  %v120_v8 = vld [vmem:[#allocation7 + $0x168] sm:$0xff]  ;;  %v382_v11 = vld [vmem:[#allocation9] sm:$0xff] }
  0x48   :  { %3691 = vmatpush1.bf16.msra.mxu0 %v3690_v40  ;;  %3723 = vmatpush3.bf16.msra.mxu1 %v3720_v35  ;;  %v3736_v9 = vpack.c.bf16 %v122_v4, %v119_v3  ;;  %v3706_v10 = vpack.c.bf16 %v120_v8, %v117_v7  ;;  %v385_v12 = vld [vmem:[#allocation9 + $0x18] sm:$0xff]  ;;  %v383_v13 = vld [vmem:[#allocation9 + $0x8] sm:$0xff]  ;;  %v386_v14 = vld [vmem:[#allocation9 + $0x20] sm:$0xff] }
  0x49   :  { %3693 = vmatprep.subr.bf16.mxu0 %v3692_v41  ;;  %3725 = vmatprep.subr.bf16.mxu1 %v3724_v44  ;;  %v4589_v15 = vpack.c.bf16 %v385_v12, %v382_v11  ;;  %v68_v17 = vld [vmem:[#allocation4 + $0x8] sm:$0xff]  ;;  %v4592_v18 = vpack.c.bf16 %v386_v14, %v383_v13  ;;  %v388_v19 = vld [vmem:[#allocation9 + $0x30] sm:$0xff]  ;;  %v389_v21 = vld [vmem:[#allocation9 + $0x38] sm:$0xff] }
  0x4a   :  { %v391_v20 = vld [vmem:[#allocation9 + $0x48] sm:$0xff]  ;;  %v392_v22 = vld [vmem:[#allocation9 + $0x50] sm:$0xff]  ;;  %v394_v25 = vld [vmem:[#allocation9 + $0x60] sm:$0xff] }
  0x4b   :  { %v4596_v23 = vpack.c.bf16 %v391_v20, %v388_v19  ;;  %v4600_v24 = vpack.c.bf16 %v392_v22, %v389_v21  ;;  %v397_v26 = vld [vmem:[#allocation9 + $0x78] sm:$0xff]  ;;  %v69_v27 = vld [vmem:[#allocation4 + $0x10] sm:$0xff]  ;;  %v395_v28 = vld [vmem:[#allocation9 + $0x68] sm:$0xff] }
  0x4c   :  { %3695 = vmatpush1.bf16.msra.mxu0 %v3694_v49  ;;  %3727 = vmatpush3.bf16.msra.mxu1 %v3724_v44  ;;  %v398_v29 = vld [vmem:[#allocation9 + $0x80] sm:$0xff]  ;;  %v4606_v30 = vpack.c.bf16 %v397_v26, %v394_v25  ;;  %v70_v32 = vld [vmem:[#allocation4 + $0x18] sm:$0xff]  ;;  %v400_v33 = vld [vmem:[#allocation9 + $0x90] sm:$0xff] }
  0x4d   :  { %3697 = vmatprep.subr.bf16.mxu0 %v3696_v51  ;;  %3729 = vmatprep.subr.bf16.mxu1 %v3728_v54  ;;  %v4610_v31 = vpack.c.bf16 %v398_v29, %v395_v28  ;;  %v403_v34 = vld [vmem:[#allocation9 + $0xa8] sm:$0xff]  ;;  %v401_v35 = vld [vmem:[#allocation9 + $0x98] sm:$0xff]  ;;  %v404_v36 = vld [vmem:[#allocation9 + $0xb0] sm:$0xff] }
  0x4e   :  { %v71_v37 = vld [vmem:[#allocation4 + $0x20] sm:$0xff]  ;;  %v4615_v38 = vpack.c.bf16 %v403_v34, %v400_v33  ;;  %v4619_v39 = vpack.c.bf16 %v404_v36, %v401_v35  ;;  %v409_v41 = vld [vmem:[#allocation9 + $0xd8] sm:$0xff]  ;;  %v72_v42 = vld [vmem:[#allocation4 + $0x28] sm:$0xff]  ;;  %v125_v35 = vlaneseq }
  0x4f   :  { %v406_v40 = vld [vmem:[#allocation9 + $0xc0] sm:$0xff]  ;;  %v407_v43 = vld [vmem:[#allocation9 + $0xc8] sm:$0xff]  ;;  %v73_v45 = vld [vmem:[#allocation4 + $0x30] sm:$0xff] }
  0x50   :  { %3699 = vmatpush1.bf16.msra.mxu0 %v3698_v59  ;;  %3731 = vmatpush3.bf16.msra.mxu1 %v3728_v54  ;;  %v410_v44 = vld [vmem:[#allocation9 + $0xe0] sm:$0xff]  ;;  %v74_v46 = vld [vmem:[#allocation4 + $0x38] sm:$0xff]  ;;  %v4624_v47 = vpack.c.bf16 %v409_v41, %v406_v40  ;;  %v412_v49 = vld [vmem:[#allocation9 + $0xf0] sm:$0xff]  ;;  %v126_v36 = vshrl.u32 %v125_v35, 7 }
  0x51   :  { %3701 = vmatprep.subr.bf16.mxu0 %v3700_v60  ;;  %3733 = vmatprep.subr.bf16.mxu1 %v3732_v63  ;;  %v4628_v48 = vpack.c.bf16 %v410_v44, %v407_v43  ;;  %v413_v51 = vld [vmem:[#allocation9 + $0xf8] sm:$0xff]  ;;  %v416_v52 = vld [vmem:[#allocation9 + $0x110] sm:$0xff]  ;;  %v418_v55 = vld [vmem:[#allocation9 + $0x120] sm:$0xff] }
  0x52   :  { %v4639_v54 = vpack.c.bf16 %v416_v52, %v413_v51  ;;  %v421_v56 = vld [vmem:[#allocation9 + $0x138] sm:$0xff]  ;;  %v419_v57 = vld [vmem:[#allocation9 + $0x128] sm:$0xff]  ;;  %v422_v58 = vld [vmem:[#allocation9 + $0x140] sm:$0xff]  ;;  %v131_v44 = vsub.s32 1, %v126_v36 }
  0x53   :  { %v4644_v59 = vpack.c.bf16 %v421_v56, %v418_v55  ;;  %v4648_v60 = vpack.c.bf16 %v422_v58, %v419_v57  ;;  %v424_v61 = vld [vmem:[#allocation9 + $0x150] sm:$0xff]  ;;  %v427_v62 = vld [vmem:[#allocation9 + $0x168] sm:$0xff]  ;;  %v390_v7 = vld [vmem:[#allocation9 + $0x40] sm:$0xff] }
  0x54   :  { %3703 = vmatpush1.bf16.msra.mxu0 %v3702_v5  ;;  %3735 = vmatpush3.bf16.msra.mxu1 %v3732_v63  ;;  %v425_v63 = vld [vmem:[#allocation9 + $0x158] sm:$0xff]  ;;  %v428_v1 = vld [vmem:[#allocation9 + $0x170] sm:$0xff]  ;;  %v4653_v2 = vpack.c.bf16 %v427_v62, %v424_v61  ;;  %v387_v5 = vld [vmem:[#allocation9 + $0x28] sm:$0xff] }
  0x55   :  { %3705 = vmatprep.subr.bf16.mxu0 %v3704_v6  ;;  %3737 = vmatprep.subr.bf16.mxu1 %v3736_v9  ;;  %v4657_v3 = vpack.c.bf16 %v428_v1, %v425_v63  ;;  %v384_v4 = vld [vmem:[#allocation9 + $0x10] sm:$0xff]  ;;  %v393_v8 = vld [vmem:[#allocation9 + $0x58] sm:$0xff]  ;;  %v399_v11 = vld [vmem:[#allocation9 + $0x88] sm:$0xff] }
  0x56   :  { %v4663_v6 = vpack.c.bf16 %v387_v5, %v384_v4  ;;  %v402_v13 = vld [vmem:[#allocation9 + $0xa0] sm:$0xff]  ;;  %v405_v14 = vld [vmem:[#allocation9 + $0xb8] sm:$0xff]  ;;  %v408_v19 = vld [vmem:[#allocation9 + $0xd0] sm:$0xff] }
  0x57   :  { %v411_v20 = vld [vmem:[#allocation9 + $0xe8] sm:$0xff]  ;;  %v414_v22 = vld [vmem:[#allocation9 + $0x100] sm:$0xff]  ;;  %v417_v25 = vld [vmem:[#allocation9 + $0x118] sm:$0xff] }
  0x58   :  { %3707 = vmatpush1.bf16.msra.mxu0 %v3706_v10  ;;  %3739 = vmatpush3.bf16.msra.mxu1 %v3736_v9  ;;  %v4671_v9 = vpack.c.bf16 %v393_v8, %v390_v7  ;;  %v396_v10 = vld [vmem:[#allocation9 + $0x70] sm:$0xff]  ;;  %v4693_v21 = vpack.c.bf16 %v411_v20, %v408_v19  ;;  %v4699_v26 = vpack.c.bf16 %v417_v25, %v414_v22  ;;  %v423_v28 = vld [vmem:[#allocation9 + $0x148] sm:$0xff]  ;;  %v429_v33 = vld [vmem:[#allocation9 + $0x178] sm:$0xff] }
  0x59   :  { %3740 = vmatprep.subr.bf16.mxu0 %v5236_v16  ;;  %3764 = vmatprep.subr.bf16.mxu1 %v5236_v16  ;;  %v4681_v12 = vpack.c.bf16 %v399_v11, %v396_v10  ;;  %v123_v40 = vld [vmem:[%s5233_s3] sm:$0x7] }
  0x5a   :  { %v132_v52 = vrot.slane %v123_v40, %v131_v44 }
  0x5b   :  { %205 = vmatmul.mubr.f32.vlgmr.msra.gmra.mrb[0].mxu0 %v67_v50  ;;  %2825 = vmatmul.mubr.f32.vlgmr.msra.gmra.mrb[0].mxu1 %v68_v17  ;;  %v415_v50 = vld [vmem:[#allocation9 + $0x108] sm:$0xff] }
  0x5c   :  { %3742 = vmatpush3.bf16.msra.mxu0 %v4589_v15  ;;  %3766 = vmatpush3.bf16.msra.mxu1 %v4592_v18  ;;  %v4635_v53 = vpack.c.bf16 %v415_v50, %v412_v49 }
  0x5d   :  { %210 = vmatprep.mubr.f32.mxu0 %v5238_v0  ;;  %3743 = vmatprep.subr.bf16.mxu0 %v5236_v16 }
  0x5e   :  { %3767 = vmatprep.subr.bf16.mxu1 %v5236_v16  ;;  %2827 = vmatprep.mubr.f32.mxu1 %v69_v27 }
  0x5f   :  { %211 = vmatmul.mubr.f32.gmra.mrb[2].mxu0 %v68_v17  ;;  %2828 = vmatmul.mubr.f32.gmra.mrb[2].mxu1 %v70_v32  ;;  %v4687_v17 = vpack.c.bf16 %v405_v14, %v402_v13 }
  0x60   :  { %3745 = vmatpush3.bf16.msra.mxu0 %v4596_v23  ;;  %216 = vmatprep.mubr.f32.mxu0 %v5238_v0 }
  0x61   :  { %3769 = vmatpush3.bf16.msra.mxu1 %v4600_v24  ;;  %3746 = vmatprep.subr.bf16.mxu0 %v5236_v16 }
  0x62   :  { %3770 = vmatprep.subr.bf16.mxu1 %v5236_v16  ;;  %2830 = vmatprep.mubr.f32.mxu1 %v71_v37 }
  0x63   :  { %217 = vmatmul.mubr.f32.gmra.mrb[4].mxu0 %v69_v27  ;;  %2831 = vmatmul.mubr.f32.gmra.mrb[4].mxu1 %v72_v42  ;;  %v420_v27 = vld [vmem:[#allocation9 + $0x130] sm:$0xff] }
  0x64   :  { %3748 = vmatpush3.bf16.msra.mxu0 %v4606_v30  ;;  %222 = vmatprep.mubr.f32.mxu0 %v5238_v0  ;;  %v4705_v29 = vpack.c.bf16 %v423_v28, %v420_v27 }
  0x65   :  { %3772 = vmatpush3.bf16.msra.mxu1 %v4610_v31  ;;  %3749 = vmatprep.subr.bf16.mxu0 %v5236_v16 }
  0x66   :  { %3773 = vmatprep.subr.bf16.mxu1 %v5236_v16  ;;  %2833 = vmatprep.mubr.f32.mxu1 %v73_v45 }
  0x67   :  { %223 = vmatmul.mubr.f32.gmra.mrb[6].mxu0 %v70_v32  ;;  %2834 = vmatmul.mubr.f32.gmra.mrb[6].mxu1 %v74_v46  ;;  %v426_v32 = vld [vmem:[#allocation9 + $0x160] sm:$0xff] }
  0x68   :  { %3751 = vmatpush3.bf16.msra.mxu0 %v4615_v38  ;;  %228 = vmatprep.mubr.f32.mxu0 %v5238_v0  ;;  %v4711_v34 = vpack.c.bf16 %v429_v33, %v426_v32 }
  0x69   :  { %3775 = vmatpush3.bf16.msra.mxu1 %v4619_v39  ;;  %3752 = vmatprep.subr.bf16.mxu0 %v5236_v16 }
  0x6a   :  { %3776 = vmatprep.subr.bf16.mxu1 %v5236_v16  ;;  %2903 = vmatprep.mubr.msk.f32.mxu1 %vm4511_vm0, %v5238_v0 }
  0x6b   :  { %229 = vmatmul.mubr.f32.gmra.mrb[8].mxu0 %v71_v37  ;;  %v135_v37 = vsub.s32 2, %v126_v36 }
  0x6c   :  { %3754 = vmatpush3.bf16.msra.mxu0 %v4624_v47  ;;  %234 = vmatprep.mubr.f32.mxu0 %v5238_v0 }
  0x6d   :  { %3778 = vmatpush3.bf16.msra.mxu1 %v4628_v48  ;;  %3755 = vmatprep.subr.bf16.mxu0 %v5236_v16  ;;  %v4742_v41 = vrot.slane %v123_v40, %v135_v37 }
  0x6e   :  { %3779 = vmatprep.subr.bf16.mxu1 %v5236_v16 }
  0x6f   :  { %235 = vmatmul.mubr.f32.gmra.mrb[10].mxu0 %v72_v42  ;;  %v127_v42 = vsub.s32 0, %v126_v36 }
  0x70   :  { %3757 = vmatpush3.bf16.msra.mxu0 %v4635_v53  ;;  %240 = vmatprep.mubr.f32.mxu0 %v5238_v0 }
  0x71   :  { %3781 = vmatpush3.bf16.msra.mxu1 %v4639_v54  ;;  %3758 = vmatprep.subr.bf16.mxu0 %v5236_v16  ;;  %v128_v51 = vrot.slane %v123_v40, %v127_v42 }
  0x72   :  { %3782 = vmatprep.subr.bf16.mxu1 %v5236_v16 }
  0x73   :  { %241 = vmatmul.mubr.f32.gmra.mrb[12].mxu0 %v73_v45 }
  0x74   :  { %3760 = vmatpush3.bf16.msra.mxu0 %v4644_v59  ;;  %246 = vmatprep.mubr.f32.mxu0 %v5238_v0 }
  0x75   :  { %3784 = vmatpush3.bf16.msra.mxu1 %v4648_v60  ;;  %3761 = vmatprep.subr.bf16.mxu0 %v5236_v16 }
  0x76   :  { %3785 = vmatprep.subr.bf16.mxu1 %v5236_v16 }
  0x77   :  { %247 = vmatmul.mubr.f32.gmra.mrb[14].mxu0 %v74_v46 }
  0x78   :  { %3763 = vmatpush3.bf16.msra.mxu0 %v4653_v2  ;;  %2868 = vmatprep.mubr.msk.f32.mxu0 %vm4511_vm0, %v5238_v0 }
  0x79   :  { %3787 = vmatpush3.bf16.msra.mxu1 %v4657_v3  ;;  %3788 = vmatprep.subr.bf16.mxu0 %v5236_v16 }
  0x7a   :  { %3812 = vmatprep.subr.bf16.mxu1 %v5236_v16 }
  0x7b   :  { %2869 = vmatmul.mubr.f32.vlgmr.msra.gmra.mrb[16].mxu0 %v5238_v0 }
  0x7c   :  { %2904 = vmatmul.mubr.f32.vlgmr.msra.gmra.mrb[8].mxu1 %v5238_v0  ;;  %3790 = vmatpush3.bf16.msra.mxu0 %v4663_v6 }
  0x7d   :  { %3791 = vmatprep.subr.bf16.mxu0 %v5236_v16  ;;  %2938 = vmatprep.mubr.msk.f32.mxu0 %vm4511_vm0, %v5238_v0 }
  0x7e   :  { %3814 = vmatpush3.bf16.msra.mxu1 %v4589_v15  ;;  %2973 = vmatprep.mubr.msk.f32.mxu1 %vm4511_vm0, %v5238_v0 }
  0x7f   :  { %3815 = vmatprep.subr.bf16.mxu1 %v5236_v16 }
  0x80   :  { %3793 = vmatpush3.bf16.msra.mxu0 %v4671_v9 }
  0x81   :  { %3794 = vmatprep.subr.bf16.mxu0 %v5236_v16 }
  0x82   :  { %3817 = vmatpush3.bf16.msra.mxu1 %v4596_v23 }
  0x83   :  { %3818 = vmatprep.subr.bf16.mxu1 %v5236_v16 }
  0x84   :  { %3796 = vmatpush3.bf16.msra.mxu0 %v4681_v12 }
  0x85   :  { %3797 = vmatprep.subr.bf16.mxu0 %v5236_v16 }
  0x86   :  { %3820 = vmatpush3.bf16.msra.mxu1 %v4606_v30 }
  0x87   :  { %3821 = vmatprep.subr.bf16.mxu1 %v5236_v16 }
  0x88   :  { %3799 = vmatpush3.bf16.msra.mxu0 %v4687_v17 }
  0x89   :  { %3800 = vmatprep.subr.bf16.mxu0 %v5236_v16 }
  0x8a   :  { %3823 = vmatpush3.bf16.msra.mxu1 %v4615_v38 }
  0x8b   :  { %3824 = vmatprep.subr.bf16.mxu1 %v5236_v16 }
  0x8c   :  { %3802 = vmatpush3.bf16.msra.mxu0 %v4693_v21 }
  0x8d   :  { %3803 = vmatprep.subr.bf16.mxu0 %v5236_v16 }
  0x8e   :  { %3826 = vmatpush3.bf16.msra.mxu1 %v4624_v47 }
  0x8f   :  { %3827 = vmatprep.subr.bf16.mxu1 %v5236_v16 }
  0x90   :  { %3805 = vmatpush3.bf16.msra.mxu0 %v4699_v26 }
  0x91   :  { %3806 = vmatprep.subr.bf16.mxu0 %v5236_v16 }
  0x92   :  { %3829 = vmatpush3.bf16.msra.mxu1 %v4635_v53 }
  0x93   :  { %3830 = vmatprep.subr.bf16.mxu1 %v5236_v16 }
  0x94   :  { %3808 = vmatpush3.bf16.msra.mxu0 %v4705_v29 }
  0x95   :  { %3809 = vmatprep.subr.bf16.mxu0 %v5236_v16 }
  0x96   :  { %3832 = vmatpush3.bf16.msra.mxu1 %v4644_v59 }
  0x97   :  { %3833 = vmatprep.subr.bf16.mxu1 %v5236_v16 }
  0x98   :  { %3811 = vmatpush3.bf16.msra.mxu0 %v4711_v34 }
  0x99   :  { %3836 = vmatprep.subr.bf16.mxu0 %v5236_v16 }
  0x9a   :  { %3835 = vmatpush3.bf16.msra.mxu1 %v4653_v2 }
  0x9b   :  { %2939 = vmatmul.mubr.f32.vlgmr.msra.gmra.mrb[18].mxu0 %v5238_v0  ;;  %3860 = vmatprep.subr.bf16.mxu1 %v5236_v16 }
  0x9c   :  { %3838 = vmatpush3.bf16.msra.mxu0 %v4592_v18  ;;  %3008 = vmatprep.mubr.msk.f32.mxu0 %vm4511_vm0, %v5238_v0 }
  0x9d   :  { %3839 = vmatprep.subr.bf16.mxu0 %v5236_v16 }
  0xa0   :  { %3841 = vmatpush3.bf16.msra.mxu0 %v4600_v24 }
  0xa1   :  { %3842 = vmatprep.subr.bf16.mxu0 %v5236_v16 }
  0xa4   :  { %3844 = vmatpush3.bf16.msra.mxu0 %v4610_v31 }
  0xa5   :  { %3845 = vmatprep.subr.bf16.mxu0 %v5236_v16 }
  0xa8   :  { %3847 = vmatpush3.bf16.msra.mxu0 %v4619_v39 }
  0xa9   :  { %3848 = vmatprep.subr.bf16.mxu0 %v5236_v16 }
  0xac   :  { %3850 = vmatpush3.bf16.msra.mxu0 %v4628_v48 }
  0xad   :  { %3851 = vmatprep.subr.bf16.mxu0 %v5236_v16 }
  0xb0   :  { %3853 = vmatpush3.bf16.msra.mxu0 %v4639_v54 }
  0xb1   :  { %3854 = vmatprep.subr.bf16.mxu0 %v5236_v16 }
  0xb4   :  { %3856 = vmatpush3.bf16.msra.mxu0 %v4648_v60 }
  0xb5   :  { %3857 = vmatprep.subr.bf16.mxu0 %v5236_v16 }
  0xb8   :  { %3859 = vmatpush3.bf16.msra.mxu0 %v4657_v3 }
  0xb9   :  { %3884 = vmatprep.subr.bf16.mxu0 %v5236_v16 }
 0x12e   :  { %v206_v43 = vpop.f32.mrb[0].mxu0  ;;  %v2826_v46 = vpop.f32.mrb[0].mxu1 }
 0x12f   :  { %v208_v45 = vpop.f32.mrb[1].mxu0  ;;  %v4745_v49 = vadd.f32 %v2826_v46, %v4742_v41  ;;  %v4747_v50 = vpop.f32.mrb[1].mxu1 }
 0x132   :  { %v212_v55 = vpop.f32.mrb[2].mxu0  ;;  %v2829_v61 = vpop.f32.mrb[2].mxu1 }
 0x133   :  { %v4749_v56 = vadd.f32 %v212_v55, %v128_v51  ;;  %v214_v57 = vpop.f32.mrb[3].mxu0  ;;  %v4754_v63 = vadd.f32 %v2829_v61, %v4742_v41  ;;  %v329_v1 = vpop.f32.mrb[3].mxu1 }
 0x134   :  { %v4751_v58 = vadd.f32 %v214_v57, %v132_v52  ;;  %v4759_v7 = vadd.f32 %v329_v1, %v4742_v41 }
 0x136   :  { %v218_v62 = vpop.f32.mrb[4].mxu0  ;;  %v2832_v10 = vpop.f32.mrb[4].mxu1 }
 0x137   :  { %v4756_v4 = vadd.f32 %v218_v62, %v128_v51  ;;  %v220_v5 = vpop.f32.mrb[5].mxu0  ;;  %v4764_v13 = vadd.f32 %v2832_v10, %v4742_v41  ;;  %v339_v14 = vpop.f32.mrb[5].mxu1 }
 0x138   :  { %v4761_v8 = vadd.f32 %v220_v5, %v132_v52  ;;  %v4769_v22 = vadd.f32 %v339_v14, %v4742_v41 }
 0x13a   :  { %v224_v11 = vpop.f32.mrb[6].mxu0  ;;  %v2835_v27 = vpop.f32.mrb[6].mxu1 }
 0x13b   :  { %v4766_v19 = vadd.f32 %v224_v11, %v128_v51  ;;  %v226_v20 = vpop.f32.mrb[7].mxu0  ;;  %v4774_v32 = vadd.f32 %v2835_v27, %v4742_v41  ;;  %v349_v33 = vpop.f32.mrb[7].mxu1  ;;  %v209_v27 = vadd.f32 %v208_v45, %v132_v52 }
 0x13c   :  { %v4771_v25 = vadd.f32 %v226_v20, %v132_v52  ;;  %v4779_v37 = vadd.f32 %v349_v33, %v4742_v41  ;;  %v207_v20 = vadd.f32 %v206_v43, %v128_v51 }
 0x13d   :  { %5240 = vst [vmem:[#allocation14_spill] sm:$0xff] %v4774_v32 }
 0x13e   :  { %v230_v28 = vpop.f32.mrb[8].mxu0 }
 0x13f   :  { %v4776_v35 = vadd.f32 %v230_v28, %v128_v51  ;;  %v232_v36 = vpop.f32.mrb[9].mxu0 }
 0x140   :  { %v4781_v40 = vadd.f32 %v232_v36, %v132_v52 }
 0x142   :  { %v236_v42 = vpop.f32.mrb[10].mxu0 }
 0x143   :  { %v4783_v44 = vadd.f32 %v236_v42, %v128_v51  ;;  %v238_v46 = vpop.f32.mrb[11].mxu0 }
 0x144   :  { %v4785_v55 = vadd.f32 %v238_v46, %v132_v52 }
 0x146   :  { %v242_v57 = vpop.f32.mrb[12].mxu0 }
 0x147   :  { %v4787_v61 = vadd.f32 %v242_v57, %v128_v51  ;;  %v244_v62 = vpop.f32.mrb[13].mxu0 }
 0x148   :  { %v4789_v1 = vadd.f32 %v244_v62, %v132_v52 }
 0x14a   :  { %v248_v5 = vpop.f32.mrb[14].mxu0 }
 0x14b   :  { %v4791_v10 = vadd.f32 %v248_v5, %v128_v51  ;;  %v250_v11 = vpop.f32.mrb[15].mxu0  ;;  %v4798_v5 = vld [vmem:[%s5234_s4] ss:$0 sm:$0xff] }
 0x14c   :  { %v4793_v14 = vadd.f32 %v250_v11, %v132_v52 }
 0x14e   :  { %5241 = vst [vmem:[#allocation15_spill] sm:$0xff] %v4793_v14  ;;  %v507_v28 = vpop.f32.mrb[16].mxu0 }
 0x14f   :  { %v581_v33 = vadd.f32 %v507_v28, %v207_v20  ;;  %v577_v36 = vpop.f32.mrb[8].mxu1  ;;  %v2870_v42 = vpop.f32.mrb[17].mxu0 }
 0x150   :  { %v588_v46 = vadd.f32 %v577_v36, %v209_v27  ;;  %v2905_v16 = vpop.f32.mrb[9].mxu1 }
 0x151   :  { %v2344_v0 = vmul.f32 -1.442695, %v581_v33  ;;  %v320_v16 = vadd.f32 %v4747_v50, %v4742_v41  ;;  %v5242_v41 = vmov 0.0   ;;  %v5243_v50 = vmov 0.0|0.0  }
 0x152   :  { %v2345_v32 = vmul.f32 -1.442695, %v588_v46 }
 0x153   :  { %4327 = vpow2.f32 %v2344_v0 }
 0x154   :  { %4329 = vpow2.f32 %v2345_v32 }
 0x15d   :  { %v4328_v57 = vpop.eup %4327 }
 0x15e   :  { %v585_v62 = vadd.f32 1.0, %v4328_v57  ;;  %v4330_v45 = vpop.eup %4329 }
 0x15f   :  { %v592_v20 = vadd.f32 1.0, %v4330_v45 }
 0x160   :  { %4331 = vrcp.f32 %v585_v62 }
 0x16a   :  { %v4332_v11 = vpop.eup %4331 }
 0x16e   :  { %v661_v43 = vpop.f32.mrb[18].mxu0 }
 0x16f   :  { %v662_v51 = vadd.f32 %v4798_v5, %v661_v43  ;;  %v2940_v52 = vpop.f32.mrb[19].mxu0 }
 0x171   :  { %v665_v0 = vmul.f32 %v4332_v11, %v662_v51 }
 0x173   :  { %v666_v27 = vadd.f32 %v665_v0, %v320_v16 }
 0x175   :  { %4333 = vtanh.f32 %v666_v27 }
 0x176   :  { %4335 = vrcp.f32 %v592_v20 }
 0x17f   :  { %v4334_v32 = vpop.eup %4333 }
 0x180   :  { %v668_v28 = vsub.f32 0.0, %v4334_v32  ;;  %v4336_v33 = vpop.eup %4335 }
 0x182   :  { %v669_v36 = vmul.f32 %v4336_v33, %v668_v28 }
 0x184   :  { %v4803_v42 = vadd.f32 %v4334_v32, %v669_v36 }
 0x186   :  { %2974 = vmatmul.mubr.f32.vlgmr.msra.gmra.mrb[10].mxu1 %v4803_v42  ;;  %671 = vst [vmem:[#allocation10] sm:$0xff] %v4803_v42  ;;  %3009 = vmatmul.mubr.f32.vlgmr.msra.gmra.mrb[20].mxu0 %v4803_v42 }
 0x187   :  { %3862 = vmatpush3.bf16.msra.mxu1 %v4663_v6  ;;  %3043 = vmatprep.mubr.msk.f32.mxu1 %vm4511_vm0, %v5242_v41 }
 0x188   :  { %3863 = vmatprep.subr.bf16.mxu1 %v5243_v50  ;;  %3886 = vmatpush3.bf16.msra.mxu0 %v4589_v15 }
 0x189   :  { %3887 = vmatprep.subr.bf16.mxu0 %v5243_v50  ;;  %3078 = vmatprep.mubr.msk.f32.mxu0 %vm4511_vm0, %v5242_v41 }
 0x18b   :  { %3865 = vmatpush3.bf16.msra.mxu1 %v4671_v9 }
 0x18c   :  { %3866 = vmatprep.subr.bf16.mxu1 %v5243_v50  ;;  %3889 = vmatpush3.bf16.msra.mxu0 %v4596_v23 }
 0x18d   :  { %3890 = vmatprep.subr.bf16.mxu0 %v5243_v50 }
 0x18f   :  { %3868 = vmatpush3.bf16.msra.mxu1 %v4681_v12 }
 0x190   :  { %3869 = vmatprep.subr.bf16.mxu1 %v5243_v50  ;;  %3892 = vmatpush3.bf16.msra.mxu0 %v4606_v30 }
 0x191   :  { %3893 = vmatprep.subr.bf16.mxu0 %v5243_v50 }
 0x193   :  { %3871 = vmatpush3.bf16.msra.mxu1 %v4687_v17 }
 0x194   :  { %3872 = vmatprep.subr.bf16.mxu1 %v5243_v50  ;;  %3895 = vmatpush3.bf16.msra.mxu0 %v4615_v38 }
 0x195   :  { %3896 = vmatprep.subr.bf16.mxu0 %v5243_v50 }
 0x197   :  { %3874 = vmatpush3.bf16.msra.mxu1 %v4693_v21 }
 0x198   :  { %3875 = vmatprep.subr.bf16.mxu1 %v5243_v50  ;;  %3898 = vmatpush3.bf16.msra.mxu0 %v4624_v47 }
 0x199   :  { %3899 = vmatprep.subr.bf16.mxu0 %v5243_v50 }
 0x19b   :  { %3877 = vmatpush3.bf16.msra.mxu1 %v4699_v26 }
 0x19c   :  { %3878 = vmatprep.subr.bf16.mxu1 %v5243_v50  ;;  %3901 = vmatpush3.bf16.msra.mxu0 %v4635_v53 }
 0x19d   :  { %3902 = vmatprep.subr.bf16.mxu0 %v5243_v50 }
 0x19f   :  { %3880 = vmatpush3.bf16.msra.mxu1 %v4705_v29 }
 0x1a0   :  { %3881 = vmatprep.subr.bf16.mxu1 %v5243_v50  ;;  %3904 = vmatpush3.bf16.msra.mxu0 %v4644_v59 }
 0x1a1   :  { %3905 = vmatprep.subr.bf16.mxu0 %v5243_v50 }
 0x1a3   :  { %3883 = vmatpush3.bf16.msra.mxu1 %v4711_v34 }
 0x1a4   :  { %3908 = vmatprep.subr.bf16.mxu1 %v5243_v50  ;;  %3907 = vmatpush3.bf16.msra.mxu0 %v4653_v2 }
 0x1a5   :  { %3932 = vmatprep.subr.bf16.mxu0 %v5243_v50 }
 0x1a6   :  { %3044 = vmatmul.mubr.f32.vlgmr.msra.gmra.mrb[12].mxu1 %v4803_v42 }
 0x1a7   :  { %3910 = vmatpush3.bf16.msra.mxu1 %v4592_v18  ;;  %3113 = vmatprep.mubr.msk.f32.mxu1 %vm4511_vm0, %v5242_v41 }
 0x1a8   :  { %3911 = vmatprep.subr.bf16.mxu1 %v5243_v50 }
 0x1ab   :  { %3913 = vmatpush3.bf16.msra.mxu1 %v4600_v24 }
 0x1ac   :  { %3914 = vmatprep.subr.bf16.mxu1 %v5243_v50 }
 0x1af   :  { %3916 = vmatpush3.bf16.msra.mxu1 %v4610_v31 }
 0x1b0   :  { %3917 = vmatprep.subr.bf16.mxu1 %v5243_v50 }
 0x1b3   :  { %3919 = vmatpush3.bf16.msra.mxu1 %v4619_v39 }
 0x1b4   :  { %3920 = vmatprep.subr.bf16.mxu1 %v5243_v50 }
 0x1b7   :  { %3922 = vmatpush3.bf16.msra.mxu1 %v4628_v48 }
 0x1b8   :  { %3923 = vmatprep.subr.bf16.mxu1 %v5243_v50 }
 0x1bb   :  { %3925 = vmatpush3.bf16.msra.mxu1 %v4639_v54 }
 0x1bc   :  { %3926 = vmatprep.subr.bf16.mxu1 %v5243_v50 }
 0x1bf   :  { %3928 = vmatpush3.bf16.msra.mxu1 %v4648_v60 }
 0x1c0   :  { %3929 = vmatprep.subr.bf16.mxu1 %v5243_v50 }
 0x1c3   :  { %3931 = vmatpush3.bf16.msra.mxu1 %v4657_v3 }
 0x1c4   :  { %3956 = vmatprep.subr.bf16.mxu1 %v5243_v50 }
 0x259   :  { %v742_v46 = vpop.f32.mrb[10].mxu1  ;;  %v812_v57 = vpop.f32.mrb[20].mxu0 }
 0x25a   :  { %v816_v62 = vadd.f32 %v742_v46, %v4749_v56  ;;  %v823_v43 = vadd.f32 %v812_v57, %v4751_v58  ;;  %v2975_v45 = vpop.f32.mrb[11].mxu1  ;;  %v3010_v51 = vpop.f32.mrb[21].mxu0 }
 0x25c   :  { %v2346_v52 = vmul.f32 -1.442695, %v816_v62  ;;  %v2347_v16 = vmul.f32 -1.442695, %v823_v43 }
 0x25e   :  { %4337 = vpow2.f32 %v2346_v52 }
 0x25f   :  { %4339 = vpow2.f32 %v2347_v16 }
 0x268   :  { %v4338_v11 = vpop.eup %4337 }
 0x269   :  { %v820_v0 = vadd.f32 1.0, %v4338_v11  ;;  %v4340_v27 = vpop.eup %4339 }
 0x26a   :  { %v827_v14 = vadd.f32 1.0, %v4340_v27 }
 0x26b   :  { %4341 = vrcp.f32 %v820_v0 }
 0x275   :  { %v4342_v33 = vpop.eup %4341 }
 0x279   :  { %v896_v20 = vpop.f32.mrb[12].mxu1 }
 0x27a   :  { %v897_v32 = vadd.f32 %v4798_v5, %v896_v20  ;;  %v3045_v28 = vpop.f32.mrb[13].mxu1 }
 0x27c   :  { %v900_v36 = vmul.f32 %v4342_v33, %v897_v32 }
 0x27e   :  { %v901_v56 = vadd.f32 %v900_v36, %v4745_v49 }
 0x280   :  { %4343 = vtanh.f32 %v901_v56 }
 0x281   :  { %4345 = vrcp.f32 %v827_v14 }
 0x28a   :  { %v4344_v58 = vpop.eup %4343 }
 0x28b   :  { %v903_v46 = vsub.f32 %v4803_v42, %v4344_v58  ;;  %v4346_v57 = vpop.eup %4345 }
 0x28d   :  { %v904_v62 = vmul.f32 %v4346_v57, %v903_v46 }
 0x28f   :  { %v4868_v43 = vadd.f32 %v4344_v58, %v904_v62 }
 0x291   :  { %3079 = vmatmul.mubr.f32.vlgmr.msra.gmra.mrb[22].mxu0 %v4868_v43  ;;  %907 = vst [vmem:[#allocation10 + $0x8] sm:$0xff] %v4868_v43  ;;  %3114 = vmatmul.mubr.f32.vlgmr.msra.gmra.mrb[14].mxu1 %v4868_v43 }
 0x292   :  { %3934 = vmatpush3.bf16.msra.mxu0 %v4663_v6  ;;  %3148 = vmatprep.mubr.msk.f32.mxu0 %vm4511_vm0, %v5242_v41 }
 0x293   :  { %3935 = vmatprep.subr.bf16.mxu0 %v5243_v50  ;;  %3958 = vmatpush3.bf16.msra.mxu1 %v4589_v15 }
 0x294   :  { %3959 = vmatprep.subr.bf16.mxu1 %v5243_v50  ;;  %3183 = vmatprep.mubr.msk.f32.mxu1 %vm4511_vm0, %v5242_v41 }
 0x296   :  { %3937 = vmatpush3.bf16.msra.mxu0 %v4671_v9 }
 0x297   :  { %3938 = vmatprep.subr.bf16.mxu0 %v5243_v50  ;;  %3961 = vmatpush3.bf16.msra.mxu1 %v4596_v23 }
 0x298   :  { %3962 = vmatprep.subr.bf16.mxu1 %v5243_v50 }
 0x29a   :  { %3940 = vmatpush3.bf16.msra.mxu0 %v4681_v12 }
 0x29b   :  { %3941 = vmatprep.subr.bf16.mxu0 %v5243_v50  ;;  %3964 = vmatpush3.bf16.msra.mxu1 %v4606_v30 }
 0x29c   :  { %3965 = vmatprep.subr.bf16.mxu1 %v5243_v50 }
 0x29e   :  { %3943 = vmatpush3.bf16.msra.mxu0 %v4687_v17 }
 0x29f   :  { %3944 = vmatprep.subr.bf16.mxu0 %v5243_v50  ;;  %3967 = vmatpush3.bf16.msra.mxu1 %v4615_v38 }
 0x2a0   :  { %3968 = vmatprep.subr.bf16.mxu1 %v5243_v50 }
 0x2a2   :  { %3946 = vmatpush3.bf16.msra.mxu0 %v4693_v21 }
 0x2a3   :  { %3947 = vmatprep.subr.bf16.mxu0 %v5243_v50  ;;  %3970 = vmatpush3.bf16.msra.mxu1 %v4624_v47 }
 0x2a4   :  { %3971 = vmatprep.subr.bf16.mxu1 %v5243_v50 }
 0x2a6   :  { %3949 = vmatpush3.bf16.msra.mxu0 %v4699_v26 }
 0x2a7   :  { %3950 = vmatprep.subr.bf16.mxu0 %v5243_v50  ;;  %3973 = vmatpush3.bf16.msra.mxu1 %v4635_v53 }
 0x2a8   :  { %3974 = vmatprep.subr.bf16.mxu1 %v5243_v50 }
 0x2aa   :  { %3952 = vmatpush3.bf16.msra.mxu0 %v4705_v29 }
 0x2ab   :  { %3953 = vmatprep.subr.bf16.mxu0 %v5243_v50  ;;  %3976 = vmatpush3.bf16.msra.mxu1 %v4644_v59 }
 0x2ac   :  { %3977 = vmatprep.subr.bf16.mxu1 %v5243_v50 }
 0x2ae   :  { %3955 = vmatpush3.bf16.msra.mxu0 %v4711_v34 }
 0x2af   :  { %3980 = vmatprep.subr.bf16.mxu0 %v5243_v50  ;;  %3979 = vmatpush3.bf16.msra.mxu1 %v4653_v2 }
 0x2b0   :  { %4004 = vmatprep.subr.bf16.mxu1 %v5243_v50 }
 0x2b1   :  { %3149 = vmatmul.mubr.f32.vlgmr.msra.gmra.mrb[24].mxu0 %v4868_v43 }
 0x2b2   :  { %3982 = vmatpush3.bf16.msra.mxu0 %v4592_v18  ;;  %3218 = vmatprep.mubr.msk.f32.mxu0 %vm4511_vm0, %v5242_v41 }
 0x2b3   :  { %3983 = vmatprep.subr.bf16.mxu0 %v5243_v50 }
 0x2b6   :  { %3985 = vmatpush3.bf16.msra.mxu0 %v4600_v24 }
 0x2b7   :  { %3986 = vmatprep.subr.bf16.mxu0 %v5243_v50 }
 0x2ba   :  { %3988 = vmatpush3.bf16.msra.mxu0 %v4610_v31 }
 0x2bb   :  { %3989 = vmatprep.subr.bf16.mxu0 %v5243_v50 }
 0x2be   :  { %3991 = vmatpush3.bf16.msra.mxu0 %v4619_v39 }
 0x2bf   :  { %3992 = vmatprep.subr.bf16.mxu0 %v5243_v50 }
 0x2c2   :  { %3994 = vmatpush3.bf16.msra.mxu0 %v4628_v48 }
 0x2c3   :  { %3995 = vmatprep.subr.bf16.mxu0 %v5243_v50 }
 0x2c6   :  { %3997 = vmatpush3.bf16.msra.mxu0 %v4639_v54 }
 0x2c7   :  { %3998 = vmatprep.subr.bf16.mxu0 %v5243_v50 }
 0x2ca   :  { %4000 = vmatpush3.bf16.msra.mxu0 %v4648_v60 }
 0x2cb   :  { %4001 = vmatprep.subr.bf16.mxu0 %v5243_v50 }
 0x2ce   :  { %4003 = vmatpush3.bf16.msra.mxu0 %v4657_v3 }
 0x2cf   :  { %4028 = vmatprep.subr.bf16.mxu0 %v5243_v50 }
 0x364   :  { %v978_v49 = vpop.f32.mrb[22].mxu0  ;;  %v1048_v14 = vpop.f32.mrb[14].mxu1 }
 0x365   :  { %v1052_v42 = vadd.f32 %v978_v49, %v4756_v4  ;;  %v1059_v45 = vadd.f32 %v1048_v14, %v4761_v8  ;;  %v3080_v51 = vpop.f32.mrb[23].mxu0  ;;  %v3115_v52 = vpop.f32.mrb[15].mxu1 }
 0x367   :  { %v2348_v11 = vmul.f32 -1.442695, %v1052_v42  ;;  %v2349_v0 = vmul.f32 -1.442695, %v1059_v45 }
 0x369   :  { %4347 = vpow2.f32 %v2348_v11 }
 0x36a   :  { %4349 = vpow2.f32 %v2349_v0 }
 0x373   :  { %v4348_v16 = vpop.eup %4347 }
 0x374   :  { %v1056_v20 = vadd.f32 1.0, %v4348_v16  ;;  %v4350_v32 = vpop.eup %4349 }
 0x375   :  { %v1063_v58 = vadd.f32 1.0, %v4350_v32 }
 0x376   :  { %4351 = vrcp.f32 %v1056_v20 }
 0x380   :  { %v4352_v36 = vpop.eup %4351 }
 0x384   :  { %v1132_v27 = vpop.f32.mrb[24].mxu0 }
 0x385   :  { %v1133_v28 = vadd.f32 %v4798_v5, %v1132_v27  ;;  %v3150_v33 = vpop.f32.mrb[25].mxu0 }
 0x387   :  { %v1136_v56 = vmul.f32 %v4352_v36, %v1133_v28 }
 0x389   :  { %v1137_v4 = vadd.f32 %v1136_v56, %v4759_v7 }
 0x38b   :  { %4353 = vtanh.f32 %v1137_v4 }
 0x38c   :  { %4355 = vrcp.f32 %v1063_v58 }
 0x395   :  { %v4354_v8 = vpop.eup %4353 }
 0x396   :  { %v1139_v46 = vsub.f32 %v4868_v43, %v4354_v8  ;;  %v4356_v57 = vpop.eup %4355 }
 0x398   :  { %v1140_v62 = vmul.f32 %v4356_v57, %v1139_v46 }
 0x39a   :  { %v4933_v49 = vadd.f32 %v4354_v8, %v1140_v62 }
 0x39c   :  { %3184 = vmatmul.mubr.f32.vlgmr.msra.gmra.mrb[16].mxu1 %v4933_v49  ;;  %1143 = vst [vmem:[#allocation10 + $0x10] sm:$0xff] %v4933_v49  ;;  %3219 = vmatmul.mubr.f32.vlgmr.msra.gmra.mrb[26].mxu0 %v4933_v49 }
 0x39d   :  { %4006 = vmatpush3.bf16.msra.mxu1 %v4663_v6  ;;  %3253 = vmatprep.mubr.msk.f32.mxu1 %vm4511_vm0, %v5242_v41 }
 0x39e   :  { %4007 = vmatprep.subr.bf16.mxu1 %v5243_v50  ;;  %4030 = vmatpush3.bf16.msra.mxu0 %v4589_v15 }
 0x39f   :  { %4031 = vmatprep.subr.bf16.mxu0 %v5243_v50  ;;  %3288 = vmatprep.mubr.msk.f32.mxu0 %vm4511_vm0, %v5242_v41 }
 0x3a1   :  { %4009 = vmatpush3.bf16.msra.mxu1 %v4671_v9 }
 0x3a2   :  { %4010 = vmatprep.subr.bf16.mxu1 %v5243_v50  ;;  %4033 = vmatpush3.bf16.msra.mxu0 %v4596_v23 }
 0x3a3   :  { %4034 = vmatprep.subr.bf16.mxu0 %v5243_v50 }
 0x3a5   :  { %4012 = vmatpush3.bf16.msra.mxu1 %v4681_v12 }
 0x3a6   :  { %4013 = vmatprep.subr.bf16.mxu1 %v5243_v50  ;;  %4036 = vmatpush3.bf16.msra.mxu0 %v4606_v30 }
 0x3a7   :  { %4037 = vmatprep.subr.bf16.mxu0 %v5243_v50 }
 0x3a9   :  { %4015 = vmatpush3.bf16.msra.mxu1 %v4687_v17 }
 0x3aa   :  { %4016 = vmatprep.subr.bf16.mxu1 %v5243_v50  ;;  %4039 = vmatpush3.bf16.msra.mxu0 %v4615_v38 }
 0x3ab   :  { %4040 = vmatprep.subr.bf16.mxu0 %v5243_v50 }
 0x3ad   :  { %4018 = vmatpush3.bf16.msra.mxu1 %v4693_v21 }
 0x3ae   :  { %4019 = vmatprep.subr.bf16.mxu1 %v5243_v50  ;;  %4042 = vmatpush3.bf16.msra.mxu0 %v4624_v47 }
 0x3af   :  { %4043 = vmatprep.subr.bf16.mxu0 %v5243_v50 }
 0x3b1   :  { %4021 = vmatpush3.bf16.msra.mxu1 %v4699_v26 }
 0x3b2   :  { %4022 = vmatprep.subr.bf16.mxu1 %v5243_v50  ;;  %4045 = vmatpush3.bf16.msra.mxu0 %v4635_v53 }
 0x3b3   :  { %4046 = vmatprep.subr.bf16.mxu0 %v5243_v50 }
 0x3b5   :  { %4024 = vmatpush3.bf16.msra.mxu1 %v4705_v29 }
 0x3b6   :  { %4025 = vmatprep.subr.bf16.mxu1 %v5243_v50  ;;  %4048 = vmatpush3.bf16.msra.mxu0 %v4644_v59 }
 0x3b7   :  { %4049 = vmatprep.subr.bf16.mxu0 %v5243_v50 }
 0x3b9   :  { %4027 = vmatpush3.bf16.msra.mxu1 %v4711_v34 }
 0x3ba   :  { %4052 = vmatprep.subr.bf16.mxu1 %v5243_v50  ;;  %4051 = vmatpush3.bf16.msra.mxu0 %v4653_v2 }
 0x3bb   :  { %4076 = vmatprep.subr.bf16.mxu0 %v5243_v50 }
 0x3bc   :  { %3254 = vmatmul.mubr.f32.vlgmr.msra.gmra.mrb[18].mxu1 %v4933_v49 }
 0x3bd   :  { %4054 = vmatpush3.bf16.msra.mxu1 %v4592_v18  ;;  %3323 = vmatprep.mubr.msk.f32.mxu1 %vm4511_vm0, %v5242_v41 }
 0x3be   :  { %4055 = vmatprep.subr.bf16.mxu1 %v5243_v50 }
 0x3c1   :  { %4057 = vmatpush3.bf16.msra.mxu1 %v4600_v24 }
 0x3c2   :  { %4058 = vmatprep.subr.bf16.mxu1 %v5243_v50 }
 0x3c5   :  { %4060 = vmatpush3.bf16.msra.mxu1 %v4610_v31 }
 0x3c6   :  { %4061 = vmatprep.subr.bf16.mxu1 %v5243_v50 }
 0x3c9   :  { %4063 = vmatpush3.bf16.msra.mxu1 %v4619_v39 }
 0x3ca   :  { %4064 = vmatprep.subr.bf16.mxu1 %v5243_v50 }
 0x3cd   :  { %4066 = vmatpush3.bf16.msra.mxu1 %v4628_v48 }
 0x3ce   :  { %4067 = vmatprep.subr.bf16.mxu1 %v5243_v50 }
 0x3d1   :  { %4069 = vmatpush3.bf16.msra.mxu1 %v4639_v54 }
 0x3d2   :  { %4070 = vmatprep.subr.bf16.mxu1 %v5243_v50 }
 0x3d5   :  { %4072 = vmatpush3.bf16.msra.mxu1 %v4648_v60 }
 0x3d6   :  { %4073 = vmatprep.subr.bf16.mxu1 %v5243_v50 }
 0x3d9   :  { %4075 = vmatpush3.bf16.msra.mxu1 %v4657_v3 }
 0x3da   :  { %4100 = vmatprep.subr.bf16.mxu1 %v5243_v50 }
 0x46f   :  { %v1214_v7 = vpop.f32.mrb[16].mxu1  ;;  %v1284_v43 = vpop.f32.mrb[26].mxu0 }
 0x470   :  { %v1288_v14 = vadd.f32 %v1214_v7, %v4766_v19  ;;  %v1295_v42 = vadd.f32 %v1284_v43, %v4771_v25  ;;  %v3185_v45 = vpop.f32.mrb[17].mxu1  ;;  %v3220_v51 = vpop.f32.mrb[27].mxu0 }
 0x472   :  { %v2350_v52 = vmul.f32 -1.442695, %v1288_v14  ;;  %v2351_v16 = vmul.f32 -1.442695, %v1295_v42 }
 0x474   :  { %4357 = vpow2.f32 %v2350_v52 }
 0x475   :  { %4359 = vpow2.f32 %v2351_v16 }
 0x47e   :  { %v4358_v11 = vpop.eup %4357 }
 0x47f   :  { %v1292_v0 = vadd.f32 1.0, %v4358_v11  ;;  %v4360_v27 = vpop.eup %4359 }
 0x480   :  { %v1299_v56 = vadd.f32 1.0, %v4360_v27 }
 0x481   :  { %4361 = vrcp.f32 %v1292_v0 }
 0x48b   :  { %v4362_v33 = vpop.eup %4361 }
 0x48f   :  { %v1368_v20 = vpop.f32.mrb[18].mxu1 }
 0x490   :  { %v1369_v32 = vadd.f32 %v4798_v5, %v1368_v20  ;;  %v3255_v28 = vpop.f32.mrb[19].mxu1 }
 0x492   :  { %v1372_v36 = vmul.f32 %v4362_v33, %v1369_v32 }
 0x494   :  { %v1373_v19 = vadd.f32 %v1372_v36, %v4754_v63 }
 0x496   :  { %4363 = vtanh.f32 %v1373_v19 }
 0x497   :  { %4365 = vrcp.f32 %v1299_v56 }
 0x4a0   :  { %v4364_v25 = vpop.eup %4363 }
 0x4a1   :  { %v1375_v58 = vsub.f32 %v4933_v49, %v4364_v25  ;;  %v4366_v4 = vpop.eup %4365 }
 0x4a3   :  { %v1376_v8 = vmul.f32 %v4366_v4, %v1375_v58 }
 0x4a5   :  { %v4998_v46 = vadd.f32 %v4364_v25, %v1376_v8 }
 0x4a7   :  { %3289 = vmatmul.mubr.f32.vlgmr.msra.gmra.mrb[28].mxu0 %v4998_v46  ;;  %1379 = vst [vmem:[#allocation10 + $0x18] sm:$0xff] %v4998_v46  ;;  %3324 = vmatmul.mubr.f32.vlgmr.msra.gmra.mrb[20].mxu1 %v4998_v46 }
 0x4a8   :  { %4078 = vmatpush3.bf16.msra.mxu0 %v4663_v6  ;;  %3358 = vmatprep.mubr.msk.f32.mxu0 %vm4511_vm0, %v5242_v41 }
 0x4a9   :  { %4079 = vmatprep.subr.bf16.mxu0 %v5243_v50  ;;  %4102 = vmatpush3.bf16.msra.mxu1 %v4589_v15 }
 0x4aa   :  { %4103 = vmatprep.subr.bf16.mxu1 %v5243_v50  ;;  %3393 = vmatprep.mubr.msk.f32.mxu1 %vm4511_vm0, %v5242_v41 }
 0x4ac   :  { %4081 = vmatpush3.bf16.msra.mxu0 %v4671_v9 }
 0x4ad   :  { %4082 = vmatprep.subr.bf16.mxu0 %v5243_v50  ;;  %4105 = vmatpush3.bf16.msra.mxu1 %v4596_v23 }
 0x4ae   :  { %4106 = vmatprep.subr.bf16.mxu1 %v5243_v50 }
 0x4b0   :  { %4084 = vmatpush3.bf16.msra.mxu0 %v4681_v12 }
 0x4b1   :  { %4085 = vmatprep.subr.bf16.mxu0 %v5243_v50  ;;  %4108 = vmatpush3.bf16.msra.mxu1 %v4606_v30 }
 0x4b2   :  { %4109 = vmatprep.subr.bf16.mxu1 %v5243_v50 }
 0x4b4   :  { %4087 = vmatpush3.bf16.msra.mxu0 %v4687_v17 }
 0x4b5   :  { %4088 = vmatprep.subr.bf16.mxu0 %v5243_v50  ;;  %4111 = vmatpush3.bf16.msra.mxu1 %v4615_v38 }
 0x4b6   :  { %4112 = vmatprep.subr.bf16.mxu1 %v5243_v50 }
 0x4b8   :  { %4090 = vmatpush3.bf16.msra.mxu0 %v4693_v21 }
 0x4b9   :  { %4091 = vmatprep.subr.bf16.mxu0 %v5243_v50  ;;  %4114 = vmatpush3.bf16.msra.mxu1 %v4624_v47 }
 0x4ba   :  { %4115 = vmatprep.subr.bf16.mxu1 %v5243_v50 }
 0x4bc   :  { %4093 = vmatpush3.bf16.msra.mxu0 %v4699_v26 }
 0x4bd   :  { %4094 = vmatprep.subr.bf16.mxu0 %v5243_v50  ;;  %4117 = vmatpush3.bf16.msra.mxu1 %v4635_v53 }
 0x4be   :  { %4118 = vmatprep.subr.bf16.mxu1 %v5243_v50 }
 0x4c0   :  { %4096 = vmatpush3.bf16.msra.mxu0 %v4705_v29 }
 0x4c1   :  { %4097 = vmatprep.subr.bf16.mxu0 %v5243_v50  ;;  %4120 = vmatpush3.bf16.msra.mxu1 %v4644_v59 }
 0x4c2   :  { %4121 = vmatprep.subr.bf16.mxu1 %v5243_v50 }
 0x4c4   :  { %4099 = vmatpush3.bf16.msra.mxu0 %v4711_v34 }
 0x4c5   :  { %4124 = vmatprep.subr.bf16.mxu0 %v5243_v50  ;;  %4123 = vmatpush3.bf16.msra.mxu1 %v4653_v2 }
 0x4c6   :  { %4148 = vmatprep.subr.bf16.mxu1 %v5243_v50 }
 0x4c7   :  { %3359 = vmatmul.mubr.f32.vlgmr.msra.gmra.mrb[30].mxu0 %v4998_v46 }
 0x4c8   :  { %4126 = vmatpush3.bf16.msra.mxu0 %v4592_v18  ;;  %3428 = vmatprep.mubr.msk.f32.mxu0 %vm4511_vm0, %v5242_v41 }
 0x4c9   :  { %4127 = vmatprep.subr.bf16.mxu0 %v5243_v50 }
 0x4cc   :  { %4129 = vmatpush3.bf16.msra.mxu0 %v4600_v24 }
 0x4cd   :  { %4130 = vmatprep.subr.bf16.mxu0 %v5243_v50 }
 0x4d0   :  { %4132 = vmatpush3.bf16.msra.mxu0 %v4610_v31 }
 0x4d1   :  { %4133 = vmatprep.subr.bf16.mxu0 %v5243_v50 }
 0x4d4   :  { %4135 = vmatpush3.bf16.msra.mxu0 %v4619_v39 }
 0x4d5   :  { %4136 = vmatprep.subr.bf16.mxu0 %v5243_v50 }
 0x4d8   :  { %4138 = vmatpush3.bf16.msra.mxu0 %v4628_v48 }
 0x4d9   :  { %4139 = vmatprep.subr.bf16.mxu0 %v5243_v50 }
 0x4dc   :  { %4141 = vmatpush3.bf16.msra.mxu0 %v4639_v54 }
 0x4dd   :  { %4142 = vmatprep.subr.bf16.mxu0 %v5243_v50 }
 0x4e0   :  { %4144 = vmatpush3.bf16.msra.mxu0 %v4648_v60 }
 0x4e1   :  { %4145 = vmatprep.subr.bf16.mxu0 %v5243_v50 }
 0x4e4   :  { %4147 = vmatpush3.bf16.msra.mxu0 %v4657_v3 }
 0x4e5   :  { %4172 = vmatprep.subr.bf16.mxu0 %v5243_v50 }
 0x57a   :  { %v1450_v63 = vpop.f32.mrb[28].mxu0  ;;  %v1520_v57 = vpop.f32.mrb[20].mxu1 }
 0x57b   :  { %v1524_v62 = vadd.f32 %v1450_v63, %v4776_v35  ;;  %v1531_v49 = vadd.f32 %v1520_v57, %v4781_v40  ;;  %v3290_v7 = vpop.f32.mrb[29].mxu0  ;;  %v3325_v43 = vpop.f32.mrb[21].mxu1 }
 0x57d   :  { %v2352_v14 = vmul.f32 -1.442695, %v1524_v62  ;;  %v2353_v45 = vmul.f32 -1.442695, %v1531_v49 }
 0x57f   :  { %4367 = vpow2.f32 %v2352_v14 }
 0x580   :  { %4369 = vpow2.f32 %v2353_v45 }
 0x589   :  { %v4368_v42 = vpop.eup %4367 }
 0x58a   :  { %v1528_v51 = vadd.f32 1.0, %v4368_v42  ;;  %v4370_v11 = vpop.eup %4369 }
 0x58b   :  { %v1535_v32 = vadd.f32 1.0, %v4370_v11 }
 0x58c   :  { %4371 = vrcp.f32 %v1528_v51 }
 0x596   :  { %v4372_v20 = vpop.eup %4371 }
 0x59a   :  { %v1604_v52 = vpop.f32.mrb[30].mxu0 }
 0x59b   :  { %v1605_v16 = vadd.f32 %v4798_v5, %v1604_v52  ;;  %v3360_v0 = vpop.f32.mrb[31].mxu0 }
 0x59d   :  { %v1608_v27 = vmul.f32 %v4372_v20, %v1605_v16 }
 0x59f   :  { %v1609_v35 = vadd.f32 %v1608_v27, %v4769_v22 }
 0x5a1   :  { %4373 = vtanh.f32 %v1609_v35 }
 0x5a2   :  { %4375 = vrcp.f32 %v1535_v32 }
 0x5ab   :  { %v4374_v40 = vpop.eup %4373 }
 0x5ac   :  { %v1611_v28 = vsub.f32 %v4998_v46, %v4374_v40  ;;  %v4376_v33 = vpop.eup %4375 }
 0x5ae   :  { %v1612_v36 = vmul.f32 %v4376_v33, %v1611_v28 }
 0x5b0   :  { %v5063_v56 = vadd.f32 %v4374_v40, %v1612_v36 }
 0x5b2   :  { %3394 = vmatmul.mubr.f32.vlgmr.msra.gmra.mrb[22].mxu1 %v5063_v56  ;;  %1615 = vst [vmem:[#allocation10 + $0x20] sm:$0xff] %v5063_v56  ;;  %3429 = vmatmul.mubr.f32.vlgmr.msra.gmra.mrb[32].mxu0 %v5063_v56 }
 0x5b3   :  { %4150 = vmatpush3.bf16.msra.mxu1 %v4663_v6  ;;  %3463 = vmatprep.mubr.msk.f32.mxu1 %vm4511_vm0, %v5242_v41 }
 0x5b4   :  { %4151 = vmatprep.subr.bf16.mxu1 %v5243_v50  ;;  %4174 = vmatpush3.bf16.msra.mxu0 %v4589_v15 }
 0x5b5   :  { %4175 = vmatprep.subr.bf16.mxu0 %v5243_v50  ;;  %3498 = vmatprep.mubr.msk.f32.mxu0 %vm4511_vm0, %v5242_v41 }
 0x5b7   :  { %4153 = vmatpush3.bf16.msra.mxu1 %v4671_v9 }
 0x5b8   :  { %4154 = vmatprep.subr.bf16.mxu1 %v5243_v50  ;;  %4177 = vmatpush3.bf16.msra.mxu0 %v4596_v23 }
 0x5b9   :  { %4178 = vmatprep.subr.bf16.mxu0 %v5243_v50 }
 0x5bb   :  { %4156 = vmatpush3.bf16.msra.mxu1 %v4681_v12 }
 0x5bc   :  { %4157 = vmatprep.subr.bf16.mxu1 %v5243_v50  ;;  %4180 = vmatpush3.bf16.msra.mxu0 %v4606_v30 }
 0x5bd   :  { %4181 = vmatprep.subr.bf16.mxu0 %v5243_v50 }
 0x5bf   :  { %4159 = vmatpush3.bf16.msra.mxu1 %v4687_v17 }
 0x5c0   :  { %4160 = vmatprep.subr.bf16.mxu1 %v5243_v50  ;;  %4183 = vmatpush3.bf16.msra.mxu0 %v4615_v38 }
 0x5c1   :  { %4184 = vmatprep.subr.bf16.mxu0 %v5243_v50 }
 0x5c3   :  { %4162 = vmatpush3.bf16.msra.mxu1 %v4693_v21 }
 0x5c4   :  { %4163 = vmatprep.subr.bf16.mxu1 %v5243_v50  ;;  %4186 = vmatpush3.bf16.msra.mxu0 %v4624_v47 }
 0x5c5   :  { %4187 = vmatprep.subr.bf16.mxu0 %v5243_v50 }
 0x5c7   :  { %4165 = vmatpush3.bf16.msra.mxu1 %v4699_v26 }
 0x5c8   :  { %4166 = vmatprep.subr.bf16.mxu1 %v5243_v50  ;;  %4189 = vmatpush3.bf16.msra.mxu0 %v4635_v53 }
 0x5c9   :  { %4190 = vmatprep.subr.bf16.mxu0 %v5243_v50 }
 0x5cb   :  { %4168 = vmatpush3.bf16.msra.mxu1 %v4705_v29 }
 0x5cc   :  { %4169 = vmatprep.subr.bf16.mxu1 %v5243_v50  ;;  %4192 = vmatpush3.bf16.msra.mxu0 %v4644_v59 }
 0x5cd   :  { %4193 = vmatprep.subr.bf16.mxu0 %v5243_v50 }
 0x5cf   :  { %4171 = vmatpush3.bf16.msra.mxu1 %v4711_v34 }
 0x5d0   :  { %4196 = vmatprep.subr.bf16.mxu1 %v5243_v50  ;;  %4195 = vmatpush3.bf16.msra.mxu0 %v4653_v2 }
 0x5d1   :  { %4220 = vmatprep.subr.bf16.mxu0 %v5243_v50 }
 0x5d2   :  { %3464 = vmatmul.mubr.f32.vlgmr.msra.gmra.mrb[24].mxu1 %v5063_v56 }
 0x5d3   :  { %4198 = vmatpush3.bf16.msra.mxu1 %v4592_v18  ;;  %3533 = vmatprep.mubr.msk.f32.mxu1 %vm4511_vm0, %v5242_v41 }
 0x5d4   :  { %4199 = vmatprep.subr.bf16.mxu1 %v5243_v50 }
 0x5d7   :  { %4201 = vmatpush3.bf16.msra.mxu1 %v4600_v24 }
 0x5d8   :  { %4202 = vmatprep.subr.bf16.mxu1 %v5243_v50 }
 0x5db   :  { %4204 = vmatpush3.bf16.msra.mxu1 %v4610_v31 }
 0x5dc   :  { %4205 = vmatprep.subr.bf16.mxu1 %v5243_v50 }
 0x5df   :  { %4207 = vmatpush3.bf16.msra.mxu1 %v4619_v39 }
 0x5e0   :  { %4208 = vmatprep.subr.bf16.mxu1 %v5243_v50 }
 0x5e3   :  { %4210 = vmatpush3.bf16.msra.mxu1 %v4628_v48 }
 0x5e4   :  { %4211 = vmatprep.subr.bf16.mxu1 %v5243_v50 }
 0x5e7   :  { %4213 = vmatpush3.bf16.msra.mxu1 %v4639_v54 }
 0x5e8   :  { %4214 = vmatprep.subr.bf16.mxu1 %v5243_v50 }
 0x5eb   :  { %4216 = vmatpush3.bf16.msra.mxu1 %v4648_v60 }
 0x5ec   :  { %4217 = vmatprep.subr.bf16.mxu1 %v5243_v50 }
 0x5ef   :  { %4219 = vmatpush3.bf16.msra.mxu1 %v4657_v3 }
 0x5f0   :  { %4244 = vmatprep.subr.bf16.mxu1 %v5243_v50 }
 0x685   :  { %v1686_v22 = vpop.f32.mrb[22].mxu1  ;;  %v1756_v19 = vpop.f32.mrb[32].mxu0 }
 0x686   :  { %v1760_v25 = vadd.f32 %v1686_v22, %v4783_v44  ;;  %v1767_v58 = vadd.f32 %v1756_v19, %v4785_v55  ;;  %v3395_v4 = vpop.f32.mrb[23].mxu1  ;;  %v3430_v8 = vpop.f32.mrb[33].mxu0  ;;  %v5245_v19 = vld [vmem:[#allocation14_spill] sm:$0xff] }
 0x688   :  { %v2354_v46 = vmul.f32 -1.442695, %v1760_v25  ;;  %v2355_v57 = vmul.f32 -1.442695, %v1767_v58 }
 0x68a   :  { %4377 = vpow2.f32 %v2354_v46 }
 0x68b   :  { %4379 = vpow2.f32 %v2355_v57 }
 0x694   :  { %v4378_v63 = vpop.eup %4377 }
 0x695   :  { %v1764_v62 = vadd.f32 1.0, %v4378_v63  ;;  %v4380_v7 = vpop.eup %4379 }
 0x696   :  { %v1771_v51 = vadd.f32 1.0, %v4380_v7 }
 0x697   :  { %4381 = vrcp.f32 %v1764_v62 }
 0x6a1   :  { %v4382_v42 = vpop.eup %4381 }
 0x6a5   :  { %v1840_v49 = vpop.f32.mrb[24].mxu1 }
 0x6a6   :  { %v1841_v43 = vadd.f32 %v4798_v5, %v1840_v49  ;;  %v3465_v14 = vpop.f32.mrb[25].mxu1 }
 0x6a8   :  { %v1844_v45 = vmul.f32 %v4382_v42, %v1841_v43 }
 0x6aa   :  { %v1845_v44 = vadd.f32 %v1844_v45, %v4764_v13 }
 0x6ac   :  { %4383 = vtanh.f32 %v1845_v44 }
 0x6ad   :  { %4385 = vrcp.f32 %v1771_v51 }
 0x6b6   :  { %v4384_v55 = vpop.eup %4383 }
 0x6b7   :  { %v1847_v52 = vsub.f32 %v5063_v56, %v4384_v55  ;;  %v4386_v11 = vpop.eup %4385 }
 0x6b9   :  { %v1848_v16 = vmul.f32 %v4386_v11, %v1847_v52 }
 0x6bb   :  { %v5128_v0 = vadd.f32 %v4384_v55, %v1848_v16 }
 0x6bd   :  { %3499 = vmatmul.mubr.f32.vlgmr.msra.gmra.mrb[34].mxu0 %v5128_v0  ;;  %1851 = vst [vmem:[#allocation10 + $0x28] sm:$0xff] %v5128_v0  ;;  %3534 = vmatmul.mubr.f32.vlgmr.msra.gmra.mrb[26].mxu1 %v5128_v0 }
 0x6be   :  { %4222 = vmatpush3.bf16.msra.mxu0 %v4663_v6  ;;  %3568 = vmatprep.mubr.msk.f32.mxu0 %vm4511_vm0, %v5242_v41 }
 0x6bf   :  { %4223 = vmatprep.subr.bf16.mxu0 %v5243_v50  ;;  %4246 = vmatpush3.bf16.msra.mxu1 %v4589_v15 }
 0x6c0   :  { %4247 = vmatprep.subr.bf16.mxu1 %v5243_v50  ;;  %3603 = vmatprep.mubr.msk.f32.mxu1 %vm4511_vm0, %v5242_v41 }
 0x6c2   :  { %4225 = vmatpush3.bf16.msra.mxu0 %v4671_v9 }
 0x6c3   :  { %4226 = vmatprep.subr.bf16.mxu0 %v5243_v50  ;;  %4249 = vmatpush3.bf16.msra.mxu1 %v4596_v23 }
 0x6c4   :  { %4250 = vmatprep.subr.bf16.mxu1 %v5243_v50 }
 0x6c6   :  { %4228 = vmatpush3.bf16.msra.mxu0 %v4681_v12 }
 0x6c7   :  { %4229 = vmatprep.subr.bf16.mxu0 %v5243_v50  ;;  %4252 = vmatpush3.bf16.msra.mxu1 %v4606_v30 }
 0x6c8   :  { %4253 = vmatprep.subr.bf16.mxu1 %v5243_v50 }
 0x6ca   :  { %4231 = vmatpush3.bf16.msra.mxu0 %v4687_v17 }
 0x6cb   :  { %4232 = vmatprep.subr.bf16.mxu0 %v5243_v50  ;;  %4255 = vmatpush3.bf16.msra.mxu1 %v4615_v38 }
 0x6cc   :  { %4256 = vmatprep.subr.bf16.mxu1 %v5243_v50 }
 0x6ce   :  { %4234 = vmatpush3.bf16.msra.mxu0 %v4693_v21 }
 0x6cf   :  { %4235 = vmatprep.subr.bf16.mxu0 %v5243_v50  ;;  %4258 = vmatpush3.bf16.msra.mxu1 %v4624_v47 }
 0x6d0   :  { %4259 = vmatprep.subr.bf16.mxu1 %v5243_v50 }
 0x6d2   :  { %4237 = vmatpush3.bf16.msra.mxu0 %v4699_v26 }
 0x6d3   :  { %4238 = vmatprep.subr.bf16.mxu0 %v5243_v50  ;;  %4261 = vmatpush3.bf16.msra.mxu1 %v4635_v53 }
 0x6d4   :  { %4262 = vmatprep.subr.bf16.mxu1 %v5243_v50 }
 0x6d6   :  { %4240 = vmatpush3.bf16.msra.mxu0 %v4705_v29 }
 0x6d7   :  { %4241 = vmatprep.subr.bf16.mxu0 %v5243_v50  ;;  %4264 = vmatpush3.bf16.msra.mxu1 %v4644_v59 }
 0x6d8   :  { %4265 = vmatprep.subr.bf16.mxu1 %v5243_v50 }
 0x6da   :  { %4243 = vmatpush3.bf16.msra.mxu0 %v4711_v34 }
 0x6db   :  { %4268 = vmatprep.subr.bf16.mxu0 %v5243_v50  ;;  %4267 = vmatpush3.bf16.msra.mxu1 %v4653_v2 }
 0x6dc   :  { %4292 = vmatprep.subr.bf16.mxu1 %v5243_v50 }
 0x6dd   :  { %3569 = vmatmul.mubr.f32.vlgmr.msra.gmra.mrb[36].mxu0 %v5128_v0 }
 0x6de   :  { %4270 = vmatpush3.bf16.msra.mxu0 %v4592_v18  ;;  %3638 = vmatprep.mubr.msk.f32.mxu0 %vm4511_vm0, %v5242_v41 }
 0x6df   :  { %4271 = vmatprep.subr.bf16.mxu0 %v5243_v50 }
 0x6e2   :  { %4273 = vmatpush3.bf16.msra.mxu0 %v4600_v24 }
 0x6e3   :  { %4274 = vmatprep.subr.bf16.mxu0 %v5243_v50 }
 0x6e6   :  { %4276 = vmatpush3.bf16.msra.mxu0 %v4610_v31 }
 0x6e7   :  { %4277 = vmatprep.subr.bf16.mxu0 %v5243_v50 }
 0x6ea   :  { %4279 = vmatpush3.bf16.msra.mxu0 %v4619_v39 }
 0x6eb   :  { %4280 = vmatprep.subr.bf16.mxu0 %v5243_v50 }
 0x6ee   :  { %4282 = vmatpush3.bf16.msra.mxu0 %v4628_v48 }
 0x6ef   :  { %4283 = vmatprep.subr.bf16.mxu0 %v5243_v50 }
 0x6f2   :  { %4285 = vmatpush3.bf16.msra.mxu0 %v4639_v54 }
 0x6f3   :  { %4286 = vmatprep.subr.bf16.mxu0 %v5243_v50 }
 0x6f6   :  { %4288 = vmatpush3.bf16.msra.mxu0 %v4648_v60 }
 0x6f7   :  { %4289 = vmatprep.subr.bf16.mxu0 %v5243_v50 }
 0x6fa   :  { %4291 = vmatpush3.bf16.msra.mxu0 %v4657_v3 }
 0x790   :  { %v1922_v15 = vpop.f32.mrb[34].mxu0  ;;  %v1992_v18 = vpop.f32.mrb[26].mxu1 }
 0x791   :  { %v1996_v23 = vadd.f32 %v1922_v15, %v4787_v61  ;;  %v2003_v24 = vadd.f32 %v1992_v18, %v4789_v1  ;;  %v3500_v30 = vpop.f32.mrb[35].mxu0  ;;  %v3535_v31 = vpop.f32.mrb[27].mxu1 }
 0x793   :  { %v2356_v38 = vmul.f32 -1.442695, %v1996_v23  ;;  %v2357_v47 = vmul.f32 -1.442695, %v2003_v24 }
 0x795   :  { %4387 = vpow2.f32 %v2356_v38 }
 0x796   :  { %4389 = vpow2.f32 %v2357_v47 }
 0x79f   :  { %v4388_v39 = vpop.eup %4387 }
 0x7a0   :  { %v2000_v48 = vadd.f32 1.0, %v4388_v39  ;;  %v4390_v54 = vpop.eup %4389 }
 0x7a1   :  { %v2007_v13 = vadd.f32 1.0, %v4390_v54 }
 0x7a2   :  { %4391 = vrcp.f32 %v2000_v48 }
 0x7ac   :  { %v4392_v2 = vpop.eup %4391 }
 0x7b0   :  { %v2076_v53 = vpop.f32.mrb[36].mxu0 }
 0x7b1   :  { %v2077_v59 = vadd.f32 %v4798_v5, %v2076_v53  ;;  %v3570_v60 = vpop.f32.mrb[37].mxu0 }
 0x7b3   :  { %v2080_v3 = vmul.f32 %v4392_v2, %v2077_v59 }
 0x7b5   :  { %v2081_v61 = vadd.f32 %v2080_v3, %v4779_v37 }
 0x7b7   :  { %4393 = vtanh.f32 %v2081_v61 }
 0x7b8   :  { %4395 = vrcp.f32 %v2007_v13 }
 0x7c1   :  { %v4394_v1 = vpop.eup %4393 }
 0x7c2   :  { %v2083_v20 = vsub.f32 %v5128_v0, %v4394_v1  ;;  %v4396_v27 = vpop.eup %4395 }
 0x7c4   :  { %v2084_v32 = vmul.f32 %v4396_v27, %v2083_v20 }
 0x7c6   :  { %v2085_v35 = vadd.f32 %v4394_v1, %v2084_v32 }
 0x7c8   :  { %3604 = vmatmul.mubr.f32.vlgmr.msra.gmra.mrb[28].mxu1 %v2085_v35  ;;  %2087 = vst [vmem:[#allocation10 + $0x30] sm:$0xff] %v2085_v35  ;;  %3639 = vmatmul.mubr.f32.vlgmr.msra.gmra.mrb[38].mxu0 %v2085_v35 }
 0x7c9   :  { %4294 = vmatpush3.bf16.msra.mxu1 %v4663_v6  ;;  %3673 = vmatprep.mubr.msk.f32.mxu1 %vm4511_vm0, %v5242_v41 }
 0x7ca   :  { %4295 = vmatprep.subr.bf16.mxu1 %v5243_v50 }
 0x7cd   :  { %4297 = vmatpush3.bf16.msra.mxu1 %v4671_v9 }
 0x7ce   :  { %4298 = vmatprep.subr.bf16.mxu1 %v5243_v50 }
 0x7d1   :  { %4300 = vmatpush3.bf16.msra.mxu1 %v4681_v12 }
 0x7d2   :  { %4301 = vmatprep.subr.bf16.mxu1 %v5243_v50 }
 0x7d5   :  { %4303 = vmatpush3.bf16.msra.mxu1 %v4687_v17  ;;  %v5244_v17 = vld [vmem:[#allocation15_spill] sm:$0xff] }
 0x7d6   :  { %4304 = vmatprep.subr.bf16.mxu1 %v5243_v50 }
 0x7d9   :  { %4306 = vmatpush3.bf16.msra.mxu1 %v4693_v21 }
 0x7da   :  { %4307 = vmatprep.subr.bf16.mxu1 %v5243_v50 }
 0x7dd   :  { %4309 = vmatpush3.bf16.msra.mxu1 %v4699_v26 }
 0x7de   :  { %4310 = vmatprep.subr.bf16.mxu1 %v5243_v50 }
 0x7e1   :  { %4312 = vmatpush3.bf16.msra.mxu1 %v4705_v29 }
 0x7e2   :  { %4313 = vmatprep.subr.bf16.mxu1 %v5243_v50 }
 0x7e5   :  { %4315 = vmatpush3.bf16.msra.mxu1 %v4711_v34  ;;  %v4407_v34 = vld [vmem:[%s5234_s4] ss:$0 sm:$0xff] }
 0x7e8   :  { %3674 = vmatmul.mubr.f32.vlgmr.msra.gmra.mrb[30].mxu1 %v2085_v35 }
 0x89b   :  { %v2158_v6 = vpop.f32.mrb[28].mxu1  ;;  %v2228_v9 = vpop.f32.mrb[38].mxu0 }
 0x89c   :  { %v2232_v12 = vadd.f32 %v2158_v6, %v4791_v10  ;;  %v2239_v37 = vadd.f32 %v2228_v9, %v5244_v17  ;;  %v3605_v21 = vpop.f32.mrb[29].mxu1  ;;  %v3640_v5 = vpop.f32.mrb[39].mxu0 }
 0x89e   :  { %v2358_v41 = vmul.f32 -1.442695, %v2232_v12  ;;  %v2359_v40 = vmul.f32 -1.442695, %v2239_v37 }
 0x8a0   :  { %4397 = vpow2.f32 %v2358_v41 }
 0x8a1   :  { %4399 = vpow2.f32 %v2359_v40 }
 0x8aa   :  { %v4398_v26 = vpop.eup %4397 }
 0x8ab   :  { %v2236_v28 = vadd.f32 1.0, %v4398_v26  ;;  %v4400_v50 = vpop.eup %4399 }
 0x8ac   :  { %v2243_v22 = vadd.f32 1.0, %v4400_v50 }
 0x8ad   :  { %4401 = vrcp.f32 %v2236_v28 }
 0x8b7   :  { %v4402_v10 = vpop.eup %4401 }
 0x8bb   :  { %v2312_v29 = vpop.f32.mrb[30].mxu1 }
 0x8bc   :  { %v2313_v33 = vadd.f32 %v4407_v34, %v2312_v29  ;;  %v3675_v36 = vpop.f32.mrb[31].mxu1 }
 0x8be   :  { %v2316_v56 = vmul.f32 %v4402_v10, %v2313_v33 }
 0x8c0   :  { %v2317_v25 = vadd.f32 %v2316_v56, %v5245_v19 }
 0x8c2   :  { %4403 = vtanh.f32 %v2317_v25 }
 0x8c3   :  { %4405 = vrcp.f32 %v2243_v22 }
 0x8cc   :  { %v4404_v58 = vpop.eup %4403 }
 0x8cd   :  { %v2319_v4 = vsub.f32 %v2085_v35, %v4404_v58  ;;  %v4406_v8 = vpop.eup %4405 }
 0x8cf   :  { %v2320_v46 = vmul.f32 %v4406_v8, %v2319_v4 }
 0x8d1   :  { %v2321_v63 = vadd.f32 %v4404_v58, %v2320_v46 }
 0x8d3   :  { %2323 = vst [vmem:[#allocation10 + $0x38] sm:$0xff] %v2321_v63 }
 0x8d4   :  { %4485 = shalt.err (!%p4482_p0)
}
 0x8d5   :  { %s4486_s14 = scalar_lea.hbm %s5235_s5, 1024 }
 0x8d6   :  { %p4487_p1 = scmp.ne.s32.totalorder %s5235_s5, %s4486_s14  ;;  %p4490_p2 = scmp.lt.u32.totalorder %s4486_s14, %s5235_s5 }
 0x8d8   :  { %p4492_p3 = pnand %p4490_p2, %p4487_p1 }
 0x8da   :  { %4495 = shalt.err (!%p4492_p3)
}
 0x8db   :  { %2336 = dma.vmem_to_hbm [thread:$0]  %s2331_s11, 1024, %s5235_s5, [#allocation6], %s4506_s1, %s4506_s1, %s4507_s17  }
 0x8dc   :  { %4500 = dma.done.wait [#allocation6], 1024  }
 0x8dd   :  { %4501 = vsyncadd [#allocation6], 4294966272 }
 0x8de   :  { %2340 = vsyncpa [#allocation5], 1 }
 0x8df   :  { %2341 = vsyncpa [#allocation8], 1 }
 0x8e0   :  { %2342 = vsyncpa [#allocation6], 1 }

</bundles_post_ra>
